<compile_context>
chip_gen: v7x
topology: tpu7x:2x2x1
jax: 0.10.0
libtpu: 0.0.40
codegen_flags: <defaults>
</compile_context>

<pallas_src>
import functools

import jax
import jax.numpy as jnp
from jax.experimental import pallas as pl
from jax.experimental.pallas import tpu as pltpu

DROP_P = 0.2
HIDDEN = 64
LANES = 128


def _lowbias32(v):
    """Cheap uint32 mixing hash (lowbias32) — pure VPU int ops, works everywhere."""
    v = v ^ (v >> 16)
    v = v * jnp.uint32(0x7FEB352D)
    v = v ^ (v >> 15)
    v = v * jnp.uint32(0x846CA68B)
    v = v ^ (v >> 16)
    return v


def _mlp_kernel(seed_ref, w1_ref, b1_ref, w2_ref, b2_ref, x_ref, o_ref, *,
                apply_dropout: bool, block_rows: int):
    # x tile: (block_rows, 128) f32, batch elements on sublanes+lanes (lane-dense).
    x = x_ref[...]
    acc = jnp.zeros_like(x)

    if apply_dropout:
        thresh = jnp.uint32(int(DROP_P * (2 ** 32)))
        scale = jnp.float32(1.0 / (1.0 - DROP_P))
        # Global flat batch index of every element in this tile (mixes in the
        # grid position so every block gets an independent mask).
        row0 = pl.program_id(0) * block_rows
        sub = jax.lax.broadcasted_iota(jnp.int32, x.shape, 0)
        lane = jax.lax.broadcasted_iota(jnp.int32, x.shape, 1)
        gidx = ((row0 + sub) * LANES + lane).astype(jnp.uint32)
        seed_u = seed_ref[0].astype(jnp.uint32)
        base = _lowbias32(gidx ^ (seed_u * jnp.uint32(0x9E3779B1)))

    # Unrolled feature loop: h_f = relu(x * w1[f] + b1[f]); (optional dropout);
    # acc += h_f * w2[f].  Pure VPU work, no MXU, h never materialized in VMEM.
    for f in range(HIDDEN):
        h = jnp.maximum(x * w1_ref[f] + b1_ref[f], 0.0)
        if apply_dropout:
            fk = jnp.uint32(((f + 1) * 0x85EBCA6B) & 0xFFFFFFFF)
            bits = _lowbias32(base + fk)
            keep = jnp.where(bits >= thresh, scale, jnp.float32(0.0))
            h = h * keep
        acc = acc + h * w2_ref[f]

    o_ref[...] = (acc + b2_ref[0]).astype(o_ref.dtype)


def simple_model_forward(x, w1, b1, w2, b2, seed, *, apply_dropout=True,
                         block_rows=256):
    """x: [N, 1] f32; w1: [1, 64]; b1: [1, 64]; w2: [64, 1]; b2: [1, 1]; seed: [1] int32."""
    n = x.shape[0]

    # Lane-dense layout: pad N up to a whole number of (block_rows, 128) tiles.
    rows = max(1, -(-n // LANES))
    rows = -(-rows // 8) * 8                       # sublane multiple
    block_rows = max(8, (min(block_rows, rows) // 8) * 8)
    rows_pad = -(-rows // block_rows) * block_rows
    n_pad = rows_pad * LANES

    x_flat = jnp.zeros((n_pad,), jnp.float32).at[:n].set(
        x.reshape(-1).astype(jnp.float32))
    x2d = x_flat.reshape(rows_pad, LANES)

    # Scalars / weights flattened for SMEM residency.
    w1_s = w1.reshape(HIDDEN).astype(jnp.float32)
    b1_s = b1.reshape(HIDDEN).astype(jnp.float32)
    w2_s = w2.reshape(HIDDEN).astype(jnp.float32)
    b2_s = b2.reshape(1).astype(jnp.float32)
    seed_s = jnp.asarray(seed, jnp.int32).reshape(1)

    grid = (rows_pad // block_rows,)
    kernel = functools.partial(_mlp_kernel, apply_dropout=apply_dropout,
                               block_rows=block_rows)

    compiler_params = None
    if jax.default_backend() == "tpu":
        compiler_params = pltpu.CompilerParams(
            dimension_semantics=("parallel",))       # megacore sharding on v7x

    smem = pltpu.MemorySpace.SMEM
    out2d = pl.pallas_call(
        kernel,
        out_shape=jax.ShapeDtypeStruct((rows_pad, LANES), jnp.float32),
        grid=grid,
        in_specs=[
            pl.BlockSpec(memory_space=smem),                       # seed
            pl.BlockSpec(memory_space=smem),                       # w1 (64,)
            pl.BlockSpec(memory_space=smem),                       # b1 (64,)
            pl.BlockSpec(memory_space=smem),                       # w2 (64,)
            pl.BlockSpec(memory_space=smem),                       # b2 (1,)
            pl.BlockSpec((block_rows, LANES), lambda i: (i, 0)),   # x tile (VMEM)
        ],
        out_specs=pl.BlockSpec((block_rows, LANES), lambda i: (i, 0)),
        compiler_params=compiler_params,
    )(seed_s, w1_s, b1_s, w2_s, b2_s, x2d)

    return out2d.reshape(-1)[:n].reshape(n, 1)


if __name__ == "__main__":
    key = jax.random.PRNGKey(0)
    k1, k2, k3, k4 = jax.random.split(key, 4)

    # Deterministic parameter init (shapes from SimpleModel.__init__).
    w1 = jax.random.normal(k1, (1, HIDDEN), jnp.float32) * 0.5
    b1 = jax.random.normal(k2, (1, HIDDEN), jnp.float32) * 0.1
    w2 = jax.random.normal(k3, (HIDDEN, 1), jnp.float32) * 0.5
    b2 = jax.random.normal(k4, (1, 1), jnp.float32) * 0.1

    # Input as in the spec: torch.linspace(-5, 5, steps=100).unsqueeze(1)
    N = 100
    x = jnp.linspace(-5.0, 5.0, N, dtype=jnp.float32).reshape(N, 1)
    seed = jnp.array([1234], dtype=jnp.int32)

    # 1) Dropout disabled (eval semantics) -> must match a pure-JAX reference.
    y_eval = jax.block_until_ready(
        simple_model_forward(x, w1, b1, w2, b2, seed, apply_dropout=False))
    h_ref = jnp.maximum(x * w1 + b1, 0.0)                     # (N, 64)
    y_ref = jnp.sum(h_ref * w2[:, 0][None, :], axis=1, keepdims=True) + b2
    assert y_eval.shape == (N, 1)
    assert jnp.allclose(y_eval, y_ref, atol=1e-4, rtol=1e-4)

    # 2) MC-dropout active (training-mode dropout applied inside the kernel).
    y_mc = jax.block_until_ready(
        simple_model_forward(x, w1, b1, w2, b2, seed, apply_dropout=True))
    assert y_mc.shape == (N, 1)
    assert bool(jnp.all(jnp.isfinite(y_mc)))

    # Different seeds -> different MC samples.
    y_mc2 = jax.block_until_ready(
        simple_model_forward(x, w1, b1, w2, b2,
                             jnp.array([777], dtype=jnp.int32),
                             apply_dropout=True))
    assert not bool(jnp.allclose(y_mc, y_mc2))

    print("KERNEL_OK")
</pallas_src>

<mosaic_0001>
module attributes {stable_mosaic.version = 11 : i64} {
  func.func @_mlp_kernel(%arg0: i32, %arg1: memref<1xi32, #tpu.memory_space<smem>>, %arg2: memref<64xf32, #tpu.memory_space<smem>>, %arg3: memref<64xf32, #tpu.memory_space<smem>>, %arg4: memref<64xf32, #tpu.memory_space<smem>>, %arg5: memref<1xf32, #tpu.memory_space<smem>>, %arg6: memref<8x128xf32, #tpu.memory_space<vmem>>, %arg7: memref<8x128xf32, #tpu.memory_space<vmem>>) attributes {dimension_semantics = [#tpu.dimension_semantics<arbitrary>], iteration_bounds = array<i64: 1>, scalar_prefetch = 0 : i64, scratch_operands = 0 : i64, tpu.core_type = #tpu.core_type<tc>, window_params = [{transform_indices = @transform_0, window_bounds = array<i64: 1>}, {transform_indices = @transform_1, window_bounds = array<i64: 64>}, {transform_indices = @transform_2, window_bounds = array<i64: 64>}, {transform_indices = @transform_3, window_bounds = array<i64: 64>}, {transform_indices = @transform_4, window_bounds = array<i64: 1>}, {transform_indices = @transform_5, window_bounds = array<i64: 8, 128>}, {transform_indices = @transform_6, window_bounds = array<i64: 8, 128>}]} {
    %c0 = arith.constant 0 : index
    %c0_0 = arith.constant 0 : index
    %0 = vector.load %arg6[%c0, %c0_0] : memref<8x128xf32, #tpu.memory_space<vmem>>, vector<8x128xf32>
    %cst = arith.constant 0.000000e+00 : f32
    %1 = vector.broadcast %cst : f32 to vector<8x128xf32>
    %c0_1 = arith.constant 0 : index
    %2 = memref.load %arg2[%c0_1] : memref<64xf32, #tpu.memory_space<smem>>
    %3 = vector.broadcast %2 : f32 to vector<8x128xf32>
    %4 = arith.mulf %0, %3 : vector<8x128xf32>
    %c0_2 = arith.constant 0 : index
    %5 = memref.load %arg3[%c0_2] : memref<64xf32, #tpu.memory_space<smem>>
    %6 = vector.broadcast %5 : f32 to vector<8x128xf32>
    %7 = arith.addf %4, %6 : vector<8x128xf32>
    %cst_3 = arith.constant 0.000000e+00 : f32
    %8 = vector.broadcast %cst_3 : f32 to vector<8x128xf32>
    %9 = arith.maximumf %7, %8 : vector<8x128xf32>
    %c0_4 = arith.constant 0 : index
    %10 = memref.load %arg4[%c0_4] : memref<64xf32, #tpu.memory_space<smem>>
    %11 = vector.broadcast %10 : f32 to vector<8x128xf32>
    %12 = arith.mulf %9, %11 : vector<8x128xf32>
    %13 = arith.addf %1, %12 : vector<8x128xf32>
    %c1 = arith.constant 1 : index
    %14 = memref.load %arg2[%c1] : memref<64xf32, #tpu.memory_space<smem>>
    %15 = vector.broadcast %14 : f32 to vector<8x128xf32>
    %16 = arith.mulf %0, %15 : vector<8x128xf32>
    %c1_5 = arith.constant 1 : index
    %17 = memref.load %arg3[%c1_5] : memref<64xf32, #tpu.memory_space<smem>>
    %18 = vector.broadcast %17 : f32 to vector<8x128xf32>
    %19 = arith.addf %16, %18 : vector<8x128xf32>
    %cst_6 = arith.constant 0.000000e+00 : f32
    %20 = vector.broadcast %cst_6 : f32 to vector<8x128xf32>
    %21 = arith.maximumf %19, %20 : vector<8x128xf32>
    %c1_7 = arith.constant 1 : index
    %22 = memref.load %arg4[%c1_7] : memref<64xf32, #tpu.memory_space<smem>>
    %23 = vector.broadcast %22 : f32 to vector<8x128xf32>
    %24 = arith.mulf %21, %23 : vector<8x128xf32>
    %25 = arith.addf %13, %24 : vector<8x128xf32>
    %c2 = arith.constant 2 : index
    %26 = memref.load %arg2[%c2] : memref<64xf32, #tpu.memory_space<smem>>
    %27 = vector.broadcast %26 : f32 to vector<8x128xf32>
    %28 = arith.mulf %0, %27 : vector<8x128xf32>
    %c2_8 = arith.constant 2 : index
    %29 = memref.load %arg3[%c2_8] : memref<64xf32, #tpu.memory_space<smem>>
    %30 = vector.broadcast %29 : f32 to vector<8x128xf32>
    %31 = arith.addf %28, %30 : vector<8x128xf32>
    %cst_9 = arith.constant 0.000000e+00 : f32
    %32 = vector.broadcast %cst_9 : f32 to vector<8x128xf32>
    %33 = arith.maximumf %31, %32 : vector<8x128xf32>
    %c2_10 = arith.constant 2 : index
    %34 = memref.load %arg4[%c2_10] : memref<64xf32, #tpu.memory_space<smem>>
    %35 = vector.broadcast %34 : f32 to vector<8x128xf32>
    %36 = arith.mulf %33, %35 : vector<8x128xf32>
    %37 = arith.addf %25, %36 : vector<8x128xf32>
    %c3 = arith.constant 3 : index
    %38 = memref.load %arg2[%c3] : memref<64xf32, #tpu.memory_space<smem>>
    %39 = vector.broadcast %38 : f32 to vector<8x128xf32>
    %40 = arith.mulf %0, %39 : vector<8x128xf32>
    %c3_11 = arith.constant 3 : index
    %41 = memref.load %arg3[%c3_11] : memref<64xf32, #tpu.memory_space<smem>>
    %42 = vector.broadcast %41 : f32 to vector<8x128xf32>
    %43 = arith.addf %40, %42 : vector<8x128xf32>
    %cst_12 = arith.constant 0.000000e+00 : f32
    %44 = vector.broadcast %cst_12 : f32 to vector<8x128xf32>
    %45 = arith.maximumf %43, %44 : vector<8x128xf32>
    %c3_13 = arith.constant 3 : index
    %46 = memref.load %arg4[%c3_13] : memref<64xf32, #tpu.memory_space<smem>>
    %47 = vector.broadcast %46 : f32 to vector<8x128xf32>
    %48 = arith.mulf %45, %47 : vector<8x128xf32>
    %49 = arith.addf %37, %48 : vector<8x128xf32>
    %c4 = arith.constant 4 : index
    %50 = memref.load %arg2[%c4] : memref<64xf32, #tpu.memory_space<smem>>
    %51 = vector.broadcast %50 : f32 to vector<8x128xf32>
    %52 = arith.mulf %0, %51 : vector<8x128xf32>
    %c4_14 = arith.constant 4 : index
    %53 = memref.load %arg3[%c4_14] : memref<64xf32, #tpu.memory_space<smem>>
    %54 = vector.broadcast %53 : f32 to vector<8x128xf32>
    %55 = arith.addf %52, %54 : vector<8x128xf32>
    %cst_15 = arith.constant 0.000000e+00 : f32
    %56 = vector.broadcast %cst_15 : f32 to vector<8x128xf32>
    %57 = arith.maximumf %55, %56 : vector<8x128xf32>
    %c4_16 = arith.constant 4 : index
    %58 = memref.load %arg4[%c4_16] : memref<64xf32, #tpu.memory_space<smem>>
    %59 = vector.broadcast %58 : f32 to vector<8x128xf32>
    %60 = arith.mulf %57, %59 : vector<8x128xf32>
    %61 = arith.addf %49, %60 : vector<8x128xf32>
    %c5 = arith.constant 5 : index
    %62 = memref.load %arg2[%c5] : memref<64xf32, #tpu.memory_space<smem>>
    %63 = vector.broadcast %62 : f32 to vector<8x128xf32>
    %64 = arith.mulf %0, %63 : vector<8x128xf32>
    %c5_17 = arith.constant 5 : index
    %65 = memref.load %arg3[%c5_17] : memref<64xf32, #tpu.memory_space<smem>>
    %66 = vector.broadcast %65 : f32 to vector<8x128xf32>
    %67 = arith.addf %64, %66 : vector<8x128xf32>
    %cst_18 = arith.constant 0.000000e+00 : f32
    %68 = vector.broadcast %cst_18 : f32 to vector<8x128xf32>
    %69 = arith.maximumf %67, %68 : vector<8x128xf32>
    %c5_19 = arith.constant 5 : index
    %70 = memref.load %arg4[%c5_19] : memref<64xf32, #tpu.memory_space<smem>>
    %71 = vector.broadcast %70 : f32 to vector<8x128xf32>
    %72 = arith.mulf %69, %71 : vector<8x128xf32>
    %73 = arith.addf %61, %72 : vector<8x128xf32>
    %c6 = arith.constant 6 : index
    %74 = memref.load %arg2[%c6] : memref<64xf32, #tpu.memory_space<smem>>
    %75 = vector.broadcast %74 : f32 to vector<8x128xf32>
    %76 = arith.mulf %0, %75 : vector<8x128xf32>
    %c6_20 = arith.constant 6 : index
    %77 = memref.load %arg3[%c6_20] : memref<64xf32, #tpu.memory_space<smem>>
    %78 = vector.broadcast %77 : f32 to vector<8x128xf32>
    %79 = arith.addf %76, %78 : vector<8x128xf32>
    %cst_21 = arith.constant 0.000000e+00 : f32
    %80 = vector.broadcast %cst_21 : f32 to vector<8x128xf32>
    %81 = arith.maximumf %79, %80 : vector<8x128xf32>
    %c6_22 = arith.constant 6 : index
    %82 = memref.load %arg4[%c6_22] : memref<64xf32, #tpu.memory_space<smem>>
    %83 = vector.broadcast %82 : f32 to vector<8x128xf32>
    %84 = arith.mulf %81, %83 : vector<8x128xf32>
    %85 = arith.addf %73, %84 : vector<8x128xf32>
    %c7 = arith.constant 7 : index
    %86 = memref.load %arg2[%c7] : memref<64xf32, #tpu.memory_space<smem>>
    %87 = vector.broadcast %86 : f32 to vector<8x128xf32>
    %88 = arith.mulf %0, %87 : vector<8x128xf32>
    %c7_23 = arith.constant 7 : index
    %89 = memref.load %arg3[%c7_23] : memref<64xf32, #tpu.memory_space<smem>>
    %90 = vector.broadcast %89 : f32 to vector<8x128xf32>
    %91 = arith.addf %88, %90 : vector<8x128xf32>
    %cst_24 = arith.constant 0.000000e+00 : f32
    %92 = vector.broadcast %cst_24 : f32 to vector<8x128xf32>
    %93 = arith.maximumf %91, %92 : vector<8x128xf32>
    %c7_25 = arith.constant 7 : index
    %94 = memref.load %arg4[%c7_25] : memref<64xf32, #tpu.memory_space<smem>>
    %95 = vector.broadcast %94 : f32 to vector<8x128xf32>
    %96 = arith.mulf %93, %95 : vector<8x128xf32>
    %97 = arith.addf %85, %96 : vector<8x128xf32>
    %c8 = arith.constant 8 : index
    %98 = memref.load %arg2[%c8] : memref<64xf32, #tpu.memory_space<smem>>
    %99 = vector.broadcast %98 : f32 to vector<8x128xf32>
    %100 = arith.mulf %0, %99 : vector<8x128xf32>
    %c8_26 = arith.constant 8 : index
    %101 = memref.load %arg3[%c8_26] : memref<64xf32, #tpu.memory_space<smem>>
    %102 = vector.broadcast %101 : f32 to vector<8x128xf32>
    %103 = arith.addf %100, %102 : vector<8x128xf32>
    %cst_27 = arith.constant 0.000000e+00 : f32
    %104 = vector.broadcast %cst_27 : f32 to vector<8x128xf32>
    %105 = arith.maximumf %103, %104 : vector<8x128xf32>
    %c8_28 = arith.constant 8 : index
    %106 = memref.load %arg4[%c8_28] : memref<64xf32, #tpu.memory_space<smem>>
    %107 = vector.broadcast %106 : f32 to vector<8x128xf32>
    %108 = arith.mulf %105, %107 : vector<8x128xf32>
    %109 = arith.addf %97, %108 : vector<8x128xf32>
    %c9 = arith.constant 9 : index
    %110 = memref.load %arg2[%c9] : memref<64xf32, #tpu.memory_space<smem>>
    %111 = vector.broadcast %110 : f32 to vector<8x128xf32>
    %112 = arith.mulf %0, %111 : vector<8x128xf32>
    %c9_29 = arith.constant 9 : index
    %113 = memref.load %arg3[%c9_29] : memref<64xf32, #tpu.memory_space<smem>>
    %114 = vector.broadcast %113 : f32 to vector<8x128xf32>
    %115 = arith.addf %112, %114 : vector<8x128xf32>
    %cst_30 = arith.constant 0.000000e+00 : f32
    %116 = vector.broadcast %cst_30 : f32 to vector<8x128xf32>
    %117 = arith.maximumf %115, %116 : vector<8x128xf32>
    %c9_31 = arith.constant 9 : index
    %118 = memref.load %arg4[%c9_31] : memref<64xf32, #tpu.memory_space<smem>>
    %119 = vector.broadcast %118 : f32 to vector<8x128xf32>
    %120 = arith.mulf %117, %119 : vector<8x128xf32>
    %121 = arith.addf %109, %120 : vector<8x128xf32>
    %c10 = arith.constant 10 : index
    %122 = memref.load %arg2[%c10] : memref<64xf32, #tpu.memory_space<smem>>
    %123 = vector.broadcast %122 : f32 to vector<8x128xf32>
    %124 = arith.mulf %0, %123 : vector<8x128xf32>
    %c10_32 = arith.constant 10 : index
    %125 = memref.load %arg3[%c10_32] : memref<64xf32, #tpu.memory_space<smem>>
    %126 = vector.broadcast %125 : f32 to vector<8x128xf32>
    %127 = arith.addf %124, %126 : vector<8x128xf32>
    %cst_33 = arith.constant 0.000000e+00 : f32
    %128 = vector.broadcast %cst_33 : f32 to vector<8x128xf32>
    %129 = arith.maximumf %127, %128 : vector<8x128xf32>
    %c10_34 = arith.constant 10 : index
    %130 = memref.load %arg4[%c10_34] : memref<64xf32, #tpu.memory_space<smem>>
    %131 = vector.broadcast %130 : f32 to vector<8x128xf32>
    %132 = arith.mulf %129, %131 : vector<8x128xf32>
    %133 = arith.addf %121, %132 : vector<8x128xf32>
    %c11 = arith.constant 11 : index
    %134 = memref.load %arg2[%c11] : memref<64xf32, #tpu.memory_space<smem>>
    %135 = vector.broadcast %134 : f32 to vector<8x128xf32>
    %136 = arith.mulf %0, %135 : vector<8x128xf32>
    %c11_35 = arith.constant 11 : index
    %137 = memref.load %arg3[%c11_35] : memref<64xf32, #tpu.memory_space<smem>>
    %138 = vector.broadcast %137 : f32 to vector<8x128xf32>
    %139 = arith.addf %136, %138 : vector<8x128xf32>
    %cst_36 = arith.constant 0.000000e+00 : f32
    %140 = vector.broadcast %cst_36 : f32 to vector<8x128xf32>
    %141 = arith.maximumf %139, %140 : vector<8x128xf32>
    %c11_37 = arith.constant 11 : index
    %142 = memref.load %arg4[%c11_37] : memref<64xf32, #tpu.memory_space<smem>>
    %143 = vector.broadcast %142 : f32 to vector<8x128xf32>
    %144 = arith.mulf %141, %143 : vector<8x128xf32>
    %145 = arith.addf %133, %144 : vector<8x128xf32>
    %c12 = arith.constant 12 : index
    %146 = memref.load %arg2[%c12] : memref<64xf32, #tpu.memory_space<smem>>
    %147 = vector.broadcast %146 : f32 to vector<8x128xf32>
    %148 = arith.mulf %0, %147 : vector<8x128xf32>
    %c12_38 = arith.constant 12 : index
    %149 = memref.load %arg3[%c12_38] : memref<64xf32, #tpu.memory_space<smem>>
    %150 = vector.broadcast %149 : f32 to vector<8x128xf32>
    %151 = arith.addf %148, %150 : vector<8x128xf32>
    %cst_39 = arith.constant 0.000000e+00 : f32
    %152 = vector.broadcast %cst_39 : f32 to vector<8x128xf32>
    %153 = arith.maximumf %151, %152 : vector<8x128xf32>
    %c12_40 = arith.constant 12 : index
    %154 = memref.load %arg4[%c12_40] : memref<64xf32, #tpu.memory_space<smem>>
    %155 = vector.broadcast %154 : f32 to vector<8x128xf32>
    %156 = arith.mulf %153, %155 : vector<8x128xf32>
    %157 = arith.addf %145, %156 : vector<8x128xf32>
    %c13 = arith.constant 13 : index
    %158 = memref.load %arg2[%c13] : memref<64xf32, #tpu.memory_space<smem>>
    %159 = vector.broadcast %158 : f32 to vector<8x128xf32>
    %160 = arith.mulf %0, %159 : vector<8x128xf32>
    %c13_41 = arith.constant 13 : index
    %161 = memref.load %arg3[%c13_41] : memref<64xf32, #tpu.memory_space<smem>>
    %162 = vector.broadcast %161 : f32 to vector<8x128xf32>
    %163 = arith.addf %160, %162 : vector<8x128xf32>
    %cst_42 = arith.constant 0.000000e+00 : f32
    %164 = vector.broadcast %cst_42 : f32 to vector<8x128xf32>
    %165 = arith.maximumf %163, %164 : vector<8x128xf32>
    %c13_43 = arith.constant 13 : index
    %166 = memref.load %arg4[%c13_43] : memref<64xf32, #tpu.memory_space<smem>>
    %167 = vector.broadcast %166 : f32 to vector<8x128xf32>
    %168 = arith.mulf %165, %167 : vector<8x128xf32>
    %169 = arith.addf %157, %168 : vector<8x128xf32>
    %c14 = arith.constant 14 : index
    %170 = memref.load %arg2[%c14] : memref<64xf32, #tpu.memory_space<smem>>
    %171 = vector.broadcast %170 : f32 to vector<8x128xf32>
    %172 = arith.mulf %0, %171 : vector<8x128xf32>
    %c14_44 = arith.constant 14 : index
    %173 = memref.load %arg3[%c14_44] : memref<64xf32, #tpu.memory_space<smem>>
    %174 = vector.broadcast %173 : f32 to vector<8x128xf32>
    %175 = arith.addf %172, %174 : vector<8x128xf32>
    %cst_45 = arith.constant 0.000000e+00 : f32
    %176 = vector.broadcast %cst_45 : f32 to vector<8x128xf32>
    %177 = arith.maximumf %175, %176 : vector<8x128xf32>
    %c14_46 = arith.constant 14 : index
    %178 = memref.load %arg4[%c14_46] : memref<64xf32, #tpu.memory_space<smem>>
    %179 = vector.broadcast %178 : f32 to vector<8x128xf32>
    %180 = arith.mulf %177, %179 : vector<8x128xf32>
    %181 = arith.addf %169, %180 : vector<8x128xf32>
    %c15 = arith.constant 15 : index
    %182 = memref.load %arg2[%c15] : memref<64xf32, #tpu.memory_space<smem>>
    %183 = vector.broadcast %182 : f32 to vector<8x128xf32>
    %184 = arith.mulf %0, %183 : vector<8x128xf32>
    %c15_47 = arith.constant 15 : index
    %185 = memref.load %arg3[%c15_47] : memref<64xf32, #tpu.memory_space<smem>>
    %186 = vector.broadcast %185 : f32 to vector<8x128xf32>
    %187 = arith.addf %184, %186 : vector<8x128xf32>
    %cst_48 = arith.constant 0.000000e+00 : f32
    %188 = vector.broadcast %cst_48 : f32 to vector<8x128xf32>
    %189 = arith.maximumf %187, %188 : vector<8x128xf32>
    %c15_49 = arith.constant 15 : index
    %190 = memref.load %arg4[%c15_49] : memref<64xf32, #tpu.memory_space<smem>>
    %191 = vector.broadcast %190 : f32 to vector<8x128xf32>
    %192 = arith.mulf %189, %191 : vector<8x128xf32>
    %193 = arith.addf %181, %192 : vector<8x128xf32>
    %c16 = arith.constant 16 : index
    %194 = memref.load %arg2[%c16] : memref<64xf32, #tpu.memory_space<smem>>
    %195 = vector.broadcast %194 : f32 to vector<8x128xf32>
    %196 = arith.mulf %0, %195 : vector<8x128xf32>
    %c16_50 = arith.constant 16 : index
    %197 = memref.load %arg3[%c16_50] : memref<64xf32, #tpu.memory_space<smem>>
    %198 = vector.broadcast %197 : f32 to vector<8x128xf32>
    %199 = arith.addf %196, %198 : vector<8x128xf32>
    %cst_51 = arith.constant 0.000000e+00 : f32
    %200 = vector.broadcast %cst_51 : f32 to vector<8x128xf32>
    %201 = arith.maximumf %199, %200 : vector<8x128xf32>
    %c16_52 = arith.constant 16 : index
    %202 = memref.load %arg4[%c16_52] : memref<64xf32, #tpu.memory_space<smem>>
    %203 = vector.broadcast %202 : f32 to vector<8x128xf32>
    %204 = arith.mulf %201, %203 : vector<8x128xf32>
    %205 = arith.addf %193, %204 : vector<8x128xf32>
    %c17 = arith.constant 17 : index
    %206 = memref.load %arg2[%c17] : memref<64xf32, #tpu.memory_space<smem>>
    %207 = vector.broadcast %206 : f32 to vector<8x128xf32>
    %208 = arith.mulf %0, %207 : vector<8x128xf32>
    %c17_53 = arith.constant 17 : index
    %209 = memref.load %arg3[%c17_53] : memref<64xf32, #tpu.memory_space<smem>>
    %210 = vector.broadcast %209 : f32 to vector<8x128xf32>
    %211 = arith.addf %208, %210 : vector<8x128xf32>
    %cst_54 = arith.constant 0.000000e+00 : f32
    %212 = vector.broadcast %cst_54 : f32 to vector<8x128xf32>
    %213 = arith.maximumf %211, %212 : vector<8x128xf32>
    %c17_55 = arith.constant 17 : index
    %214 = memref.load %arg4[%c17_55] : memref<64xf32, #tpu.memory_space<smem>>
    %215 = vector.broadcast %214 : f32 to vector<8x128xf32>
    %216 = arith.mulf %213, %215 : vector<8x128xf32>
    %217 = arith.addf %205, %216 : vector<8x128xf32>
    %c18 = arith.constant 18 : index
    %218 = memref.load %arg2[%c18] : memref<64xf32, #tpu.memory_space<smem>>
    %219 = vector.broadcast %218 : f32 to vector<8x128xf32>
    %220 = arith.mulf %0, %219 : vector<8x128xf32>
    %c18_56 = arith.constant 18 : index
    %221 = memref.load %arg3[%c18_56] : memref<64xf32, #tpu.memory_space<smem>>
    %222 = vector.broadcast %221 : f32 to vector<8x128xf32>
    %223 = arith.addf %220, %222 : vector<8x128xf32>
    %cst_57 = arith.constant 0.000000e+00 : f32
    %224 = vector.broadcast %cst_57 : f32 to vector<8x128xf32>
    %225 = arith.maximumf %223, %224 : vector<8x128xf32>
    %c18_58 = arith.constant 18 : index
    %226 = memref.load %arg4[%c18_58] : memref<64xf32, #tpu.memory_space<smem>>
    %227 = vector.broadcast %226 : f32 to vector<8x128xf32>
    %228 = arith.mulf %225, %227 : vector<8x128xf32>
    %229 = arith.addf %217, %228 : vector<8x128xf32>
    %c19 = arith.constant 19 : index
    %230 = memref.load %arg2[%c19] : memref<64xf32, #tpu.memory_space<smem>>
    %231 = vector.broadcast %230 : f32 to vector<8x128xf32>
    %232 = arith.mulf %0, %231 : vector<8x128xf32>
    %c19_59 = arith.constant 19 : index
    %233 = memref.load %arg3[%c19_59] : memref<64xf32, #tpu.memory_space<smem>>
    %234 = vector.broadcast %233 : f32 to vector<8x128xf32>
    %235 = arith.addf %232, %234 : vector<8x128xf32>
    %cst_60 = arith.constant 0.000000e+00 : f32
    %236 = vector.broadcast %cst_60 : f32 to vector<8x128xf32>
    %237 = arith.maximumf %235, %236 : vector<8x128xf32>
    %c19_61 = arith.constant 19 : index
    %238 = memref.load %arg4[%c19_61] : memref<64xf32, #tpu.memory_space<smem>>
    %239 = vector.broadcast %238 : f32 to vector<8x128xf32>
    %240 = arith.mulf %237, %239 : vector<8x128xf32>
    %241 = arith.addf %229, %240 : vector<8x128xf32>
    %c20 = arith.constant 20 : index
    %242 = memref.load %arg2[%c20] : memref<64xf32, #tpu.memory_space<smem>>
    %243 = vector.broadcast %242 : f32 to vector<8x128xf32>
    %244 = arith.mulf %0, %243 : vector<8x128xf32>
    %c20_62 = arith.constant 20 : index
    %245 = memref.load %arg3[%c20_62] : memref<64xf32, #tpu.memory_space<smem>>
    %246 = vector.broadcast %245 : f32 to vector<8x128xf32>
    %247 = arith.addf %244, %246 : vector<8x128xf32>
    %cst_63 = arith.constant 0.000000e+00 : f32
    %248 = vector.broadcast %cst_63 : f32 to vector<8x128xf32>
    %249 = arith.maximumf %247, %248 : vector<8x128xf32>
    %c20_64 = arith.constant 20 : index
    %250 = memref.load %arg4[%c20_64] : memref<64xf32, #tpu.memory_space<smem>>
    %251 = vector.broadcast %250 : f32 to vector<8x128xf32>
    %252 = arith.mulf %249, %251 : vector<8x128xf32>
    %253 = arith.addf %241, %252 : vector<8x128xf32>
    %c21 = arith.constant 21 : index
    %254 = memref.load %arg2[%c21] : memref<64xf32, #tpu.memory_space<smem>>
    %255 = vector.broadcast %254 : f32 to vector<8x128xf32>
    %256 = arith.mulf %0, %255 : vector<8x128xf32>
    %c21_65 = arith.constant 21 : index
    %257 = memref.load %arg3[%c21_65] : memref<64xf32, #tpu.memory_space<smem>>
    %258 = vector.broadcast %257 : f32 to vector<8x128xf32>
    %259 = arith.addf %256, %258 : vector<8x128xf32>
    %cst_66 = arith.constant 0.000000e+00 : f32
    %260 = vector.broadcast %cst_66 : f32 to vector<8x128xf32>
    %261 = arith.maximumf %259, %260 : vector<8x128xf32>
    %c21_67 = arith.constant 21 : index
    %262 = memref.load %arg4[%c21_67] : memref<64xf32, #tpu.memory_space<smem>>
    %263 = vector.broadcast %262 : f32 to vector<8x128xf32>
    %264 = arith.mulf %261, %263 : vector<8x128xf32>
    %265 = arith.addf %253, %264 : vector<8x128xf32>
    %c22 = arith.constant 22 : index
    %266 = memref.load %arg2[%c22] : memref<64xf32, #tpu.memory_space<smem>>
    %267 = vector.broadcast %266 : f32 to vector<8x128xf32>
    %268 = arith.mulf %0, %267 : vector<8x128xf32>
    %c22_68 = arith.constant 22 : index
    %269 = memref.load %arg3[%c22_68] : memref<64xf32, #tpu.memory_space<smem>>
    %270 = vector.broadcast %269 : f32 to vector<8x128xf32>
    %271 = arith.addf %268, %270 : vector<8x128xf32>
    %cst_69 = arith.constant 0.000000e+00 : f32
    %272 = vector.broadcast %cst_69 : f32 to vector<8x128xf32>
    %273 = arith.maximumf %271, %272 : vector<8x128xf32>
    %c22_70 = arith.constant 22 : index
    %274 = memref.load %arg4[%c22_70] : memref<64xf32, #tpu.memory_space<smem>>
    %275 = vector.broadcast %274 : f32 to vector<8x128xf32>
    %276 = arith.mulf %273, %275 : vector<8x128xf32>
    %277 = arith.addf %265, %276 : vector<8x128xf32>
    %c23 = arith.constant 23 : index
    %278 = memref.load %arg2[%c23] : memref<64xf32, #tpu.memory_space<smem>>
    %279 = vector.broadcast %278 : f32 to vector<8x128xf32>
    %280 = arith.mulf %0, %279 : vector<8x128xf32>
    %c23_71 = arith.constant 23 : index
    %281 = memref.load %arg3[%c23_71] : memref<64xf32, #tpu.memory_space<smem>>
    %282 = vector.broadcast %281 : f32 to vector<8x128xf32>
    %283 = arith.addf %280, %282 : vector<8x128xf32>
    %cst_72 = arith.constant 0.000000e+00 : f32
    %284 = vector.broadcast %cst_72 : f32 to vector<8x128xf32>
    %285 = arith.maximumf %283, %284 : vector<8x128xf32>
    %c23_73 = arith.constant 23 : index
    %286 = memref.load %arg4[%c23_73] : memref<64xf32, #tpu.memory_space<smem>>
    %287 = vector.broadcast %286 : f32 to vector<8x128xf32>
    %288 = arith.mulf %285, %287 : vector<8x128xf32>
    %289 = arith.addf %277, %288 : vector<8x128xf32>
    %c24 = arith.constant 24 : index
    %290 = memref.load %arg2[%c24] : memref<64xf32, #tpu.memory_space<smem>>
    %291 = vector.broadcast %290 : f32 to vector<8x128xf32>
    %292 = arith.mulf %0, %291 : vector<8x128xf32>
    %c24_74 = arith.constant 24 : index
    %293 = memref.load %arg3[%c24_74] : memref<64xf32, #tpu.memory_space<smem>>
    %294 = vector.broadcast %293 : f32 to vector<8x128xf32>
    %295 = arith.addf %292, %294 : vector<8x128xf32>
    %cst_75 = arith.constant 0.000000e+00 : f32
    %296 = vector.broadcast %cst_75 : f32 to vector<8x128xf32>
    %297 = arith.maximumf %295, %296 : vector<8x128xf32>
    %c24_76 = arith.constant 24 : index
    %298 = memref.load %arg4[%c24_76] : memref<64xf32, #tpu.memory_space<smem>>
    %299 = vector.broadcast %298 : f32 to vector<8x128xf32>
    %300 = arith.mulf %297, %299 : vector<8x128xf32>
    %301 = arith.addf %289, %300 : vector<8x128xf32>
    %c25 = arith.constant 25 : index
    %302 = memref.load %arg2[%c25] : memref<64xf32, #tpu.memory_space<smem>>
    %303 = vector.broadcast %302 : f32 to vector<8x128xf32>
    %304 = arith.mulf %0, %303 : vector<8x128xf32>
    %c25_77 = arith.constant 25 : index
    %305 = memref.load %arg3[%c25_77] : memref<64xf32, #tpu.memory_space<smem>>
    %306 = vector.broadcast %305 : f32 to vector<8x128xf32>
    %307 = arith.addf %304, %306 : vector<8x128xf32>
    %cst_78 = arith.constant 0.000000e+00 : f32
    %308 = vector.broadcast %cst_78 : f32 to vector<8x128xf32>
    %309 = arith.maximumf %307, %308 : vector<8x128xf32>
    %c25_79 = arith.constant 25 : index
    %310 = memref.load %arg4[%c25_79] : memref<64xf32, #tpu.memory_space<smem>>
    %311 = vector.broadcast %310 : f32 to vector<8x128xf32>
    %312 = arith.mulf %309, %311 : vector<8x128xf32>
    %313 = arith.addf %301, %312 : vector<8x128xf32>
    %c26 = arith.constant 26 : index
    %314 = memref.load %arg2[%c26] : memref<64xf32, #tpu.memory_space<smem>>
    %315 = vector.broadcast %314 : f32 to vector<8x128xf32>
    %316 = arith.mulf %0, %315 : vector<8x128xf32>
    %c26_80 = arith.constant 26 : index
    %317 = memref.load %arg3[%c26_80] : memref<64xf32, #tpu.memory_space<smem>>
    %318 = vector.broadcast %317 : f32 to vector<8x128xf32>
    %319 = arith.addf %316, %318 : vector<8x128xf32>
    %cst_81 = arith.constant 0.000000e+00 : f32
    %320 = vector.broadcast %cst_81 : f32 to vector<8x128xf32>
    %321 = arith.maximumf %319, %320 : vector<8x128xf32>
    %c26_82 = arith.constant 26 : index
    %322 = memref.load %arg4[%c26_82] : memref<64xf32, #tpu.memory_space<smem>>
    %323 = vector.broadcast %322 : f32 to vector<8x128xf32>
    %324 = arith.mulf %321, %323 : vector<8x128xf32>
    %325 = arith.addf %313, %324 : vector<8x128xf32>
    %c27 = arith.constant 27 : index
    %326 = memref.load %arg2[%c27] : memref<64xf32, #tpu.memory_space<smem>>
    %327 = vector.broadcast %326 : f32 to vector<8x128xf32>
    %328 = arith.mulf %0, %327 : vector<8x128xf32>
    %c27_83 = arith.constant 27 : index
    %329 = memref.load %arg3[%c27_83] : memref<64xf32, #tpu.memory_space<smem>>
    %330 = vector.broadcast %329 : f32 to vector<8x128xf32>
    %331 = arith.addf %328, %330 : vector<8x128xf32>
    %cst_84 = arith.constant 0.000000e+00 : f32
    %332 = vector.broadcast %cst_84 : f32 to vector<8x128xf32>
    %333 = arith.maximumf %331, %332 : vector<8x128xf32>
    %c27_85 = arith.constant 27 : index
    %334 = memref.load %arg4[%c27_85] : memref<64xf32, #tpu.memory_space<smem>>
    %335 = vector.broadcast %334 : f32 to vector<8x128xf32>
    %336 = arith.mulf %333, %335 : vector<8x128xf32>
    %337 = arith.addf %325, %336 : vector<8x128xf32>
    %c28 = arith.constant 28 : index
    %338 = memref.load %arg2[%c28] : memref<64xf32, #tpu.memory_space<smem>>
    %339 = vector.broadcast %338 : f32 to vector<8x128xf32>
    %340 = arith.mulf %0, %339 : vector<8x128xf32>
    %c28_86 = arith.constant 28 : index
    %341 = memref.load %arg3[%c28_86] : memref<64xf32, #tpu.memory_space<smem>>
    %342 = vector.broadcast %341 : f32 to vector<8x128xf32>
    %343 = arith.addf %340, %342 : vector<8x128xf32>
    %cst_87 = arith.constant 0.000000e+00 : f32
    %344 = vector.broadcast %cst_87 : f32 to vector<8x128xf32>
    %345 = arith.maximumf %343, %344 : vector<8x128xf32>
    %c28_88 = arith.constant 28 : index
    %346 = memref.load %arg4[%c28_88] : memref<64xf32, #tpu.memory_space<smem>>
    %347 = vector.broadcast %346 : f32 to vector<8x128xf32>
    %348 = arith.mulf %345, %347 : vector<8x128xf32>
    %349 = arith.addf %337, %348 : vector<8x128xf32>
    %c29 = arith.constant 29 : index
    %350 = memref.load %arg2[%c29] : memref<64xf32, #tpu.memory_space<smem>>
    %351 = vector.broadcast %350 : f32 to vector<8x128xf32>
    %352 = arith.mulf %0, %351 : vector<8x128xf32>
    %c29_89 = arith.constant 29 : index
    %353 = memref.load %arg3[%c29_89] : memref<64xf32, #tpu.memory_space<smem>>
    %354 = vector.broadcast %353 : f32 to vector<8x128xf32>
    %355 = arith.addf %352, %354 : vector<8x128xf32>
    %cst_90 = arith.constant 0.000000e+00 : f32
    %356 = vector.broadcast %cst_90 : f32 to vector<8x128xf32>
    %357 = arith.maximumf %355, %356 : vector<8x128xf32>
    %c29_91 = arith.constant 29 : index
    %358 = memref.load %arg4[%c29_91] : memref<64xf32, #tpu.memory_space<smem>>
    %359 = vector.broadcast %358 : f32 to vector<8x128xf32>
    %360 = arith.mulf %357, %359 : vector<8x128xf32>
    %361 = arith.addf %349, %360 : vector<8x128xf32>
    %c30 = arith.constant 30 : index
    %362 = memref.load %arg2[%c30] : memref<64xf32, #tpu.memory_space<smem>>
    %363 = vector.broadcast %362 : f32 to vector<8x128xf32>
    %364 = arith.mulf %0, %363 : vector<8x128xf32>
    %c30_92 = arith.constant 30 : index
    %365 = memref.load %arg3[%c30_92] : memref<64xf32, #tpu.memory_space<smem>>
    %366 = vector.broadcast %365 : f32 to vector<8x128xf32>
    %367 = arith.addf %364, %366 : vector<8x128xf32>
    %cst_93 = arith.constant 0.000000e+00 : f32
    %368 = vector.broadcast %cst_93 : f32 to vector<8x128xf32>
    %369 = arith.maximumf %367, %368 : vector<8x128xf32>
    %c30_94 = arith.constant 30 : index
    %370 = memref.load %arg4[%c30_94] : memref<64xf32, #tpu.memory_space<smem>>
    %371 = vector.broadcast %370 : f32 to vector<8x128xf32>
    %372 = arith.mulf %369, %371 : vector<8x128xf32>
    %373 = arith.addf %361, %372 : vector<8x128xf32>
    %c31 = arith.constant 31 : index
    %374 = memref.load %arg2[%c31] : memref<64xf32, #tpu.memory_space<smem>>
    %375 = vector.broadcast %374 : f32 to vector<8x128xf32>
    %376 = arith.mulf %0, %375 : vector<8x128xf32>
    %c31_95 = arith.constant 31 : index
    %377 = memref.load %arg3[%c31_95] : memref<64xf32, #tpu.memory_space<smem>>
    %378 = vector.broadcast %377 : f32 to vector<8x128xf32>
    %379 = arith.addf %376, %378 : vector<8x128xf32>
    %cst_96 = arith.constant 0.000000e+00 : f32
    %380 = vector.broadcast %cst_96 : f32 to vector<8x128xf32>
    %381 = arith.maximumf %379, %380 : vector<8x128xf32>
    %c31_97 = arith.constant 31 : index
    %382 = memref.load %arg4[%c31_97] : memref<64xf32, #tpu.memory_space<smem>>
    %383 = vector.broadcast %382 : f32 to vector<8x128xf32>
    %384 = arith.mulf %381, %383 : vector<8x128xf32>
    %385 = arith.addf %373, %384 : vector<8x128xf32>
    %c32 = arith.constant 32 : index
    %386 = memref.load %arg2[%c32] : memref<64xf32, #tpu.memory_space<smem>>
    %387 = vector.broadcast %386 : f32 to vector<8x128xf32>
    %388 = arith.mulf %0, %387 : vector<8x128xf32>
    %c32_98 = arith.constant 32 : index
    %389 = memref.load %arg3[%c32_98] : memref<64xf32, #tpu.memory_space<smem>>
    %390 = vector.broadcast %389 : f32 to vector<8x128xf32>
    %391 = arith.addf %388, %390 : vector<8x128xf32>
    %cst_99 = arith.constant 0.000000e+00 : f32
    %392 = vector.broadcast %cst_99 : f32 to vector<8x128xf32>
    %393 = arith.maximumf %391, %392 : vector<8x128xf32>
    %c32_100 = arith.constant 32 : index
    %394 = memref.load %arg4[%c32_100] : memref<64xf32, #tpu.memory_space<smem>>
    %395 = vector.broadcast %394 : f32 to vector<8x128xf32>
    %396 = arith.mulf %393, %395 : vector<8x128xf32>
    %397 = arith.addf %385, %396 : vector<8x128xf32>
    %c33 = arith.constant 33 : index
    %398 = memref.load %arg2[%c33] : memref<64xf32, #tpu.memory_space<smem>>
    %399 = vector.broadcast %398 : f32 to vector<8x128xf32>
    %400 = arith.mulf %0, %399 : vector<8x128xf32>
    %c33_101 = arith.constant 33 : index
    %401 = memref.load %arg3[%c33_101] : memref<64xf32, #tpu.memory_space<smem>>
    %402 = vector.broadcast %401 : f32 to vector<8x128xf32>
    %403 = arith.addf %400, %402 : vector<8x128xf32>
    %cst_102 = arith.constant 0.000000e+00 : f32
    %404 = vector.broadcast %cst_102 : f32 to vector<8x128xf32>
    %405 = arith.maximumf %403, %404 : vector<8x128xf32>
    %c33_103 = arith.constant 33 : index
    %406 = memref.load %arg4[%c33_103] : memref<64xf32, #tpu.memory_space<smem>>
    %407 = vector.broadcast %406 : f32 to vector<8x128xf32>
    %408 = arith.mulf %405, %407 : vector<8x128xf32>
    %409 = arith.addf %397, %408 : vector<8x128xf32>
    %c34 = arith.constant 34 : index
    %410 = memref.load %arg2[%c34] : memref<64xf32, #tpu.memory_space<smem>>
    %411 = vector.broadcast %410 : f32 to vector<8x128xf32>
    %412 = arith.mulf %0, %411 : vector<8x128xf32>
    %c34_104 = arith.constant 34 : index
    %413 = memref.load %arg3[%c34_104] : memref<64xf32, #tpu.memory_space<smem>>
    %414 = vector.broadcast %413 : f32 to vector<8x128xf32>
    %415 = arith.addf %412, %414 : vector<8x128xf32>
    %cst_105 = arith.constant 0.000000e+00 : f32
    %416 = vector.broadcast %cst_105 : f32 to vector<8x128xf32>
    %417 = arith.maximumf %415, %416 : vector<8x128xf32>
    %c34_106 = arith.constant 34 : index
    %418 = memref.load %arg4[%c34_106] : memref<64xf32, #tpu.memory_space<smem>>
    %419 = vector.broadcast %418 : f32 to vector<8x128xf32>
    %420 = arith.mulf %417, %419 : vector<8x128xf32>
    %421 = arith.addf %409, %420 : vector<8x128xf32>
    %c35 = arith.constant 35 : index
    %422 = memref.load %arg2[%c35] : memref<64xf32, #tpu.memory_space<smem>>
    %423 = vector.broadcast %422 : f32 to vector<8x128xf32>
    %424 = arith.mulf %0, %423 : vector<8x128xf32>
    %c35_107 = arith.constant 35 : index
    %425 = memref.load %arg3[%c35_107] : memref<64xf32, #tpu.memory_space<smem>>
    %426 = vector.broadcast %425 : f32 to vector<8x128xf32>
    %427 = arith.addf %424, %426 : vector<8x128xf32>
    %cst_108 = arith.constant 0.000000e+00 : f32
    %428 = vector.broadcast %cst_108 : f32 to vector<8x128xf32>
    %429 = arith.maximumf %427, %428 : vector<8x128xf32>
    %c35_109 = arith.constant 35 : index
    %430 = memref.load %arg4[%c35_109] : memref<64xf32, #tpu.memory_space<smem>>
    %431 = vector.broadcast %430 : f32 to vector<8x128xf32>
    %432 = arith.mulf %429, %431 : vector<8x128xf32>
    %433 = arith.addf %421, %432 : vector<8x128xf32>
    %c36 = arith.constant 36 : index
    %434 = memref.load %arg2[%c36] : memref<64xf32, #tpu.memory_space<smem>>
    %435 = vector.broadcast %434 : f32 to vector<8x128xf32>
    %436 = arith.mulf %0, %435 : vector<8x128xf32>
    %c36_110 = arith.constant 36 : index
    %437 = memref.load %arg3[%c36_110] : memref<64xf32, #tpu.memory_space<smem>>
    %438 = vector.broadcast %437 : f32 to vector<8x128xf32>
    %439 = arith.addf %436, %438 : vector<8x128xf32>
    %cst_111 = arith.constant 0.000000e+00 : f32
    %440 = vector.broadcast %cst_111 : f32 to vector<8x128xf32>
    %441 = arith.maximumf %439, %440 : vector<8x128xf32>
    %c36_112 = arith.constant 36 : index
    %442 = memref.load %arg4[%c36_112] : memref<64xf32, #tpu.memory_space<smem>>
    %443 = vector.broadcast %442 : f32 to vector<8x128xf32>
    %444 = arith.mulf %441, %443 : vector<8x128xf32>
    %445 = arith.addf %433, %444 : vector<8x128xf32>
    %c37 = arith.constant 37 : index
    %446 = memref.load %arg2[%c37] : memref<64xf32, #tpu.memory_space<smem>>
    %447 = vector.broadcast %446 : f32 to vector<8x128xf32>
    %448 = arith.mulf %0, %447 : vector<8x128xf32>
    %c37_113 = arith.constant 37 : index
    %449 = memref.load %arg3[%c37_113] : memref<64xf32, #tpu.memory_space<smem>>
    %450 = vector.broadcast %449 : f32 to vector<8x128xf32>
    %451 = arith.addf %448, %450 : vector<8x128xf32>
    %cst_114 = arith.constant 0.000000e+00 : f32
    %452 = vector.broadcast %cst_114 : f32 to vector<8x128xf32>
    %453 = arith.maximumf %451, %452 : vector<8x128xf32>
    %c37_115 = arith.constant 37 : index
    %454 = memref.load %arg4[%c37_115] : memref<64xf32, #tpu.memory_space<smem>>
    %455 = vector.broadcast %454 : f32 to vector<8x128xf32>
    %456 = arith.mulf %453, %455 : vector<8x128xf32>
    %457 = arith.addf %445, %456 : vector<8x128xf32>
    %c38 = arith.constant 38 : index
    %458 = memref.load %arg2[%c38] : memref<64xf32, #tpu.memory_space<smem>>
    %459 = vector.broadcast %458 : f32 to vector<8x128xf32>
    %460 = arith.mulf %0, %459 : vector<8x128xf32>
    %c38_116 = arith.constant 38 : index
    %461 = memref.load %arg3[%c38_116] : memref<64xf32, #tpu.memory_space<smem>>
    %462 = vector.broadcast %461 : f32 to vector<8x128xf32>
    %463 = arith.addf %460, %462 : vector<8x128xf32>
    %cst_117 = arith.constant 0.000000e+00 : f32
    %464 = vector.broadcast %cst_117 : f32 to vector<8x128xf32>
    %465 = arith.maximumf %463, %464 : vector<8x128xf32>
    %c38_118 = arith.constant 38 : index
    %466 = memref.load %arg4[%c38_118] : memref<64xf32, #tpu.memory_space<smem>>
    %467 = vector.broadcast %466 : f32 to vector<8x128xf32>
    %468 = arith.mulf %465, %467 : vector<8x128xf32>
    %469 = arith.addf %457, %468 : vector<8x128xf32>
    %c39 = arith.constant 39 : index
    %470 = memref.load %arg2[%c39] : memref<64xf32, #tpu.memory_space<smem>>
    %471 = vector.broadcast %470 : f32 to vector<8x128xf32>
    %472 = arith.mulf %0, %471 : vector<8x128xf32>
    %c39_119 = arith.constant 39 : index
    %473 = memref.load %arg3[%c39_119] : memref<64xf32, #tpu.memory_space<smem>>
    %474 = vector.broadcast %473 : f32 to vector<8x128xf32>
    %475 = arith.addf %472, %474 : vector<8x128xf32>
    %cst_120 = arith.constant 0.000000e+00 : f32
    %476 = vector.broadcast %cst_120 : f32 to vector<8x128xf32>
    %477 = arith.maximumf %475, %476 : vector<8x128xf32>
    %c39_121 = arith.constant 39 : index
    %478 = memref.load %arg4[%c39_121] : memref<64xf32, #tpu.memory_space<smem>>
    %479 = vector.broadcast %478 : f32 to vector<8x128xf32>
    %480 = arith.mulf %477, %479 : vector<8x128xf32>
    %481 = arith.addf %469, %480 : vector<8x128xf32>
    %c40 = arith.constant 40 : index
    %482 = memref.load %arg2[%c40] : memref<64xf32, #tpu.memory_space<smem>>
    %483 = vector.broadcast %482 : f32 to vector<8x128xf32>
    %484 = arith.mulf %0, %483 : vector<8x128xf32>
    %c40_122 = arith.constant 40 : index
    %485 = memref.load %arg3[%c40_122] : memref<64xf32, #tpu.memory_space<smem>>
    %486 = vector.broadcast %485 : f32 to vector<8x128xf32>
    %487 = arith.addf %484, %486 : vector<8x128xf32>
    %cst_123 = arith.constant 0.000000e+00 : f32
    %488 = vector.broadcast %cst_123 : f32 to vector<8x128xf32>
    %489 = arith.maximumf %487, %488 : vector<8x128xf32>
    %c40_124 = arith.constant 40 : index
    %490 = memref.load %arg4[%c40_124] : memref<64xf32, #tpu.memory_space<smem>>
    %491 = vector.broadcast %490 : f32 to vector<8x128xf32>
    %492 = arith.mulf %489, %491 : vector<8x128xf32>
    %493 = arith.addf %481, %492 : vector<8x128xf32>
    %c41 = arith.constant 41 : index
    %494 = memref.load %arg2[%c41] : memref<64xf32, #tpu.memory_space<smem>>
    %495 = vector.broadcast %494 : f32 to vector<8x128xf32>
    %496 = arith.mulf %0, %495 : vector<8x128xf32>
    %c41_125 = arith.constant 41 : index
    %497 = memref.load %arg3[%c41_125] : memref<64xf32, #tpu.memory_space<smem>>
    %498 = vector.broadcast %497 : f32 to vector<8x128xf32>
    %499 = arith.addf %496, %498 : vector<8x128xf32>
    %cst_126 = arith.constant 0.000000e+00 : f32
    %500 = vector.broadcast %cst_126 : f32 to vector<8x128xf32>
    %501 = arith.maximumf %499, %500 : vector<8x128xf32>
    %c41_127 = arith.constant 41 : index
    %502 = memref.load %arg4[%c41_127] : memref<64xf32, #tpu.memory_space<smem>>
    %503 = vector.broadcast %502 : f32 to vector<8x128xf32>
    %504 = arith.mulf %501, %503 : vector<8x128xf32>
    %505 = arith.addf %493, %504 : vector<8x128xf32>
    %c42 = arith.constant 42 : index
    %506 = memref.load %arg2[%c42] : memref<64xf32, #tpu.memory_space<smem>>
    %507 = vector.broadcast %506 : f32 to vector<8x128xf32>
    %508 = arith.mulf %0, %507 : vector<8x128xf32>
    %c42_128 = arith.constant 42 : index
    %509 = memref.load %arg3[%c42_128] : memref<64xf32, #tpu.memory_space<smem>>
    %510 = vector.broadcast %509 : f32 to vector<8x128xf32>
    %511 = arith.addf %508, %510 : vector<8x128xf32>
    %cst_129 = arith.constant 0.000000e+00 : f32
    %512 = vector.broadcast %cst_129 : f32 to vector<8x128xf32>
    %513 = arith.maximumf %511, %512 : vector<8x128xf32>
    %c42_130 = arith.constant 42 : index
    %514 = memref.load %arg4[%c42_130] : memref<64xf32, #tpu.memory_space<smem>>
    %515 = vector.broadcast %514 : f32 to vector<8x128xf32>
    %516 = arith.mulf %513, %515 : vector<8x128xf32>
    %517 = arith.addf %505, %516 : vector<8x128xf32>
    %c43 = arith.constant 43 : index
    %518 = memref.load %arg2[%c43] : memref<64xf32, #tpu.memory_space<smem>>
    %519 = vector.broadcast %518 : f32 to vector<8x128xf32>
    %520 = arith.mulf %0, %519 : vector<8x128xf32>
    %c43_131 = arith.constant 43 : index
    %521 = memref.load %arg3[%c43_131] : memref<64xf32, #tpu.memory_space<smem>>
    %522 = vector.broadcast %521 : f32 to vector<8x128xf32>
    %523 = arith.addf %520, %522 : vector<8x128xf32>
    %cst_132 = arith.constant 0.000000e+00 : f32
    %524 = vector.broadcast %cst_132 : f32 to vector<8x128xf32>
    %525 = arith.maximumf %523, %524 : vector<8x128xf32>
    %c43_133 = arith.constant 43 : index
    %526 = memref.load %arg4[%c43_133] : memref<64xf32, #tpu.memory_space<smem>>
    %527 = vector.broadcast %526 : f32 to vector<8x128xf32>
    %528 = arith.mulf %525, %527 : vector<8x128xf32>
    %529 = arith.addf %517, %528 : vector<8x128xf32>
    %c44 = arith.constant 44 : index
    %530 = memref.load %arg2[%c44] : memref<64xf32, #tpu.memory_space<smem>>
    %531 = vector.broadcast %530 : f32 to vector<8x128xf32>
    %532 = arith.mulf %0, %531 : vector<8x128xf32>
    %c44_134 = arith.constant 44 : index
    %533 = memref.load %arg3[%c44_134] : memref<64xf32, #tpu.memory_space<smem>>
    %534 = vector.broadcast %533 : f32 to vector<8x128xf32>
    %535 = arith.addf %532, %534 : vector<8x128xf32>
    %cst_135 = arith.constant 0.000000e+00 : f32
    %536 = vector.broadcast %cst_135 : f32 to vector<8x128xf32>
    %537 = arith.maximumf %535, %536 : vector<8x128xf32>
    %c44_136 = arith.constant 44 : index
    %538 = memref.load %arg4[%c44_136] : memref<64xf32, #tpu.memory_space<smem>>
    %539 = vector.broadcast %538 : f32 to vector<8x128xf32>
    %540 = arith.mulf %537, %539 : vector<8x128xf32>
    %541 = arith.addf %529, %540 : vector<8x128xf32>
    %c45 = arith.constant 45 : index
    %542 = memref.load %arg2[%c45] : memref<64xf32, #tpu.memory_space<smem>>
    %543 = vector.broadcast %542 : f32 to vector<8x128xf32>
    %544 = arith.mulf %0, %543 : vector<8x128xf32>
    %c45_137 = arith.constant 45 : index
    %545 = memref.load %arg3[%c45_137] : memref<64xf32, #tpu.memory_space<smem>>
    %546 = vector.broadcast %545 : f32 to vector<8x128xf32>
    %547 = arith.addf %544, %546 : vector<8x128xf32>
    %cst_138 = arith.constant 0.000000e+00 : f32
    %548 = vector.broadcast %cst_138 : f32 to vector<8x128xf32>
    %549 = arith.maximumf %547, %548 : vector<8x128xf32>
    %c45_139 = arith.constant 45 : index
    %550 = memref.load %arg4[%c45_139] : memref<64xf32, #tpu.memory_space<smem>>
    %551 = vector.broadcast %550 : f32 to vector<8x128xf32>
    %552 = arith.mulf %549, %551 : vector<8x128xf32>
    %553 = arith.addf %541, %552 : vector<8x128xf32>
    %c46 = arith.constant 46 : index
    %554 = memref.load %arg2[%c46] : memref<64xf32, #tpu.memory_space<smem>>
    %555 = vector.broadcast %554 : f32 to vector<8x128xf32>
    %556 = arith.mulf %0, %555 : vector<8x128xf32>
    %c46_140 = arith.constant 46 : index
    %557 = memref.load %arg3[%c46_140] : memref<64xf32, #tpu.memory_space<smem>>
    %558 = vector.broadcast %557 : f32 to vector<8x128xf32>
    %559 = arith.addf %556, %558 : vector<8x128xf32>
    %cst_141 = arith.constant 0.000000e+00 : f32
    %560 = vector.broadcast %cst_141 : f32 to vector<8x128xf32>
    %561 = arith.maximumf %559, %560 : vector<8x128xf32>
    %c46_142 = arith.constant 46 : index
    %562 = memref.load %arg4[%c46_142] : memref<64xf32, #tpu.memory_space<smem>>
    %563 = vector.broadcast %562 : f32 to vector<8x128xf32>
    %564 = arith.mulf %561, %563 : vector<8x128xf32>
    %565 = arith.addf %553, %564 : vector<8x128xf32>
    %c47 = arith.constant 47 : index
    %566 = memref.load %arg2[%c47] : memref<64xf32, #tpu.memory_space<smem>>
    %567 = vector.broadcast %566 : f32 to vector<8x128xf32>
    %568 = arith.mulf %0, %567 : vector<8x128xf32>
    %c47_143 = arith.constant 47 : index
    %569 = memref.load %arg3[%c47_143] : memref<64xf32, #tpu.memory_space<smem>>
    %570 = vector.broadcast %569 : f32 to vector<8x128xf32>
    %571 = arith.addf %568, %570 : vector<8x128xf32>
    %cst_144 = arith.constant 0.000000e+00 : f32
    %572 = vector.broadcast %cst_144 : f32 to vector<8x128xf32>
    %573 = arith.maximumf %571, %572 : vector<8x128xf32>
    %c47_145 = arith.constant 47 : index
    %574 = memref.load %arg4[%c47_145] : memref<64xf32, #tpu.memory_space<smem>>
    %575 = vector.broadcast %574 : f32 to vector<8x128xf32>
    %576 = arith.mulf %573, %575 : vector<8x128xf32>
    %577 = arith.addf %565, %576 : vector<8x128xf32>
    %c48 = arith.constant 48 : index
    %578 = memref.load %arg2[%c48] : memref<64xf32, #tpu.memory_space<smem>>
    %579 = vector.broadcast %578 : f32 to vector<8x128xf32>
    %580 = arith.mulf %0, %579 : vector<8x128xf32>
    %c48_146 = arith.constant 48 : index
    %581 = memref.load %arg3[%c48_146] : memref<64xf32, #tpu.memory_space<smem>>
    %582 = vector.broadcast %581 : f32 to vector<8x128xf32>
    %583 = arith.addf %580, %582 : vector<8x128xf32>
    %cst_147 = arith.constant 0.000000e+00 : f32
    %584 = vector.broadcast %cst_147 : f32 to vector<8x128xf32>
    %585 = arith.maximumf %583, %584 : vector<8x128xf32>
    %c48_148 = arith.constant 48 : index
    %586 = memref.load %arg4[%c48_148] : memref<64xf32, #tpu.memory_space<smem>>
    %587 = vector.broadcast %586 : f32 to vector<8x128xf32>
    %588 = arith.mulf %585, %587 : vector<8x128xf32>
    %589 = arith.addf %577, %588 : vector<8x128xf32>
    %c49 = arith.constant 49 : index
    %590 = memref.load %arg2[%c49] : memref<64xf32, #tpu.memory_space<smem>>
    %591 = vector.broadcast %590 : f32 to vector<8x128xf32>
    %592 = arith.mulf %0, %591 : vector<8x128xf32>
    %c49_149 = arith.constant 49 : index
    %593 = memref.load %arg3[%c49_149] : memref<64xf32, #tpu.memory_space<smem>>
    %594 = vector.broadcast %593 : f32 to vector<8x128xf32>
    %595 = arith.addf %592, %594 : vector<8x128xf32>
    %cst_150 = arith.constant 0.000000e+00 : f32
    %596 = vector.broadcast %cst_150 : f32 to vector<8x128xf32>
    %597 = arith.maximumf %595, %596 : vector<8x128xf32>
    %c49_151 = arith.constant 49 : index
    %598 = memref.load %arg4[%c49_151] : memref<64xf32, #tpu.memory_space<smem>>
    %599 = vector.broadcast %598 : f32 to vector<8x128xf32>
    %600 = arith.mulf %597, %599 : vector<8x128xf32>
    %601 = arith.addf %589, %600 : vector<8x128xf32>
    %c50 = arith.constant 50 : index
    %602 = memref.load %arg2[%c50] : memref<64xf32, #tpu.memory_space<smem>>
    %603 = vector.broadcast %602 : f32 to vector<8x128xf32>
    %604 = arith.mulf %0, %603 : vector<8x128xf32>
    %c50_152 = arith.constant 50 : index
    %605 = memref.load %arg3[%c50_152] : memref<64xf32, #tpu.memory_space<smem>>
    %606 = vector.broadcast %605 : f32 to vector<8x128xf32>
    %607 = arith.addf %604, %606 : vector<8x128xf32>
    %cst_153 = arith.constant 0.000000e+00 : f32
    %608 = vector.broadcast %cst_153 : f32 to vector<8x128xf32>
    %609 = arith.maximumf %607, %608 : vector<8x128xf32>
    %c50_154 = arith.constant 50 : index
    %610 = memref.load %arg4[%c50_154] : memref<64xf32, #tpu.memory_space<smem>>
    %611 = vector.broadcast %610 : f32 to vector<8x128xf32>
    %612 = arith.mulf %609, %611 : vector<8x128xf32>
    %613 = arith.addf %601, %612 : vector<8x128xf32>
    %c51 = arith.constant 51 : index
    %614 = memref.load %arg2[%c51] : memref<64xf32, #tpu.memory_space<smem>>
    %615 = vector.broadcast %614 : f32 to vector<8x128xf32>
    %616 = arith.mulf %0, %615 : vector<8x128xf32>
    %c51_155 = arith.constant 51 : index
    %617 = memref.load %arg3[%c51_155] : memref<64xf32, #tpu.memory_space<smem>>
    %618 = vector.broadcast %617 : f32 to vector<8x128xf32>
    %619 = arith.addf %616, %618 : vector<8x128xf32>
    %cst_156 = arith.constant 0.000000e+00 : f32
    %620 = vector.broadcast %cst_156 : f32 to vector<8x128xf32>
    %621 = arith.maximumf %619, %620 : vector<8x128xf32>
    %c51_157 = arith.constant 51 : index
    %622 = memref.load %arg4[%c51_157] : memref<64xf32, #tpu.memory_space<smem>>
    %623 = vector.broadcast %622 : f32 to vector<8x128xf32>
    %624 = arith.mulf %621, %623 : vector<8x128xf32>
    %625 = arith.addf %613, %624 : vector<8x128xf32>
    %c52 = arith.constant 52 : index
    %626 = memref.load %arg2[%c52] : memref<64xf32, #tpu.memory_space<smem>>
    %627 = vector.broadcast %626 : f32 to vector<8x128xf32>
    %628 = arith.mulf %0, %627 : vector<8x128xf32>
    %c52_158 = arith.constant 52 : index
    %629 = memref.load %arg3[%c52_158] : memref<64xf32, #tpu.memory_space<smem>>
    %630 = vector.broadcast %629 : f32 to vector<8x128xf32>
    %631 = arith.addf %628, %630 : vector<8x128xf32>
    %cst_159 = arith.constant 0.000000e+00 : f32
    %632 = vector.broadcast %cst_159 : f32 to vector<8x128xf32>
    %633 = arith.maximumf %631, %632 : vector<8x128xf32>
    %c52_160 = arith.constant 52 : index
    %634 = memref.load %arg4[%c52_160] : memref<64xf32, #tpu.memory_space<smem>>
    %635 = vector.broadcast %634 : f32 to vector<8x128xf32>
    %636 = arith.mulf %633, %635 : vector<8x128xf32>
    %637 = arith.addf %625, %636 : vector<8x128xf32>
    %c53 = arith.constant 53 : index
    %638 = memref.load %arg2[%c53] : memref<64xf32, #tpu.memory_space<smem>>
    %639 = vector.broadcast %638 : f32 to vector<8x128xf32>
    %640 = arith.mulf %0, %639 : vector<8x128xf32>
    %c53_161 = arith.constant 53 : index
    %641 = memref.load %arg3[%c53_161] : memref<64xf32, #tpu.memory_space<smem>>
    %642 = vector.broadcast %641 : f32 to vector<8x128xf32>
    %643 = arith.addf %640, %642 : vector<8x128xf32>
    %cst_162 = arith.constant 0.000000e+00 : f32
    %644 = vector.broadcast %cst_162 : f32 to vector<8x128xf32>
    %645 = arith.maximumf %643, %644 : vector<8x128xf32>
    %c53_163 = arith.constant 53 : index
    %646 = memref.load %arg4[%c53_163] : memref<64xf32, #tpu.memory_space<smem>>
    %647 = vector.broadcast %646 : f32 to vector<8x128xf32>
    %648 = arith.mulf %645, %647 : vector<8x128xf32>
    %649 = arith.addf %637, %648 : vector<8x128xf32>
    %c54 = arith.constant 54 : index
    %650 = memref.load %arg2[%c54] : memref<64xf32, #tpu.memory_space<smem>>
    %651 = vector.broadcast %650 : f32 to vector<8x128xf32>
    %652 = arith.mulf %0, %651 : vector<8x128xf32>
    %c54_164 = arith.constant 54 : index
    %653 = memref.load %arg3[%c54_164] : memref<64xf32, #tpu.memory_space<smem>>
    %654 = vector.broadcast %653 : f32 to vector<8x128xf32>
    %655 = arith.addf %652, %654 : vector<8x128xf32>
    %cst_165 = arith.constant 0.000000e+00 : f32
    %656 = vector.broadcast %cst_165 : f32 to vector<8x128xf32>
    %657 = arith.maximumf %655, %656 : vector<8x128xf32>
    %c54_166 = arith.constant 54 : index
    %658 = memref.load %arg4[%c54_166] : memref<64xf32, #tpu.memory_space<smem>>
    %659 = vector.broadcast %658 : f32 to vector<8x128xf32>
    %660 = arith.mulf %657, %659 : vector<8x128xf32>
    %661 = arith.addf %649, %660 : vector<8x128xf32>
    %c55 = arith.constant 55 : index
    %662 = memref.load %arg2[%c55] : memref<64xf32, #tpu.memory_space<smem>>
    %663 = vector.broadcast %662 : f32 to vector<8x128xf32>
    %664 = arith.mulf %0, %663 : vector<8x128xf32>
    %c55_167 = arith.constant 55 : index
    %665 = memref.load %arg3[%c55_167] : memref<64xf32, #tpu.memory_space<smem>>
    %666 = vector.broadcast %665 : f32 to vector<8x128xf32>
    %667 = arith.addf %664, %666 : vector<8x128xf32>
    %cst_168 = arith.constant 0.000000e+00 : f32
    %668 = vector.broadcast %cst_168 : f32 to vector<8x128xf32>
    %669 = arith.maximumf %667, %668 : vector<8x128xf32>
    %c55_169 = arith.constant 55 : index
    %670 = memref.load %arg4[%c55_169] : memref<64xf32, #tpu.memory_space<smem>>
    %671 = vector.broadcast %670 : f32 to vector<8x128xf32>
    %672 = arith.mulf %669, %671 : vector<8x128xf32>
    %673 = arith.addf %661, %672 : vector<8x128xf32>
    %c56 = arith.constant 56 : index
    %674 = memref.load %arg2[%c56] : memref<64xf32, #tpu.memory_space<smem>>
    %675 = vector.broadcast %674 : f32 to vector<8x128xf32>
    %676 = arith.mulf %0, %675 : vector<8x128xf32>
    %c56_170 = arith.constant 56 : index
    %677 = memref.load %arg3[%c56_170] : memref<64xf32, #tpu.memory_space<smem>>
    %678 = vector.broadcast %677 : f32 to vector<8x128xf32>
    %679 = arith.addf %676, %678 : vector<8x128xf32>
    %cst_171 = arith.constant 0.000000e+00 : f32
    %680 = vector.broadcast %cst_171 : f32 to vector<8x128xf32>
    %681 = arith.maximumf %679, %680 : vector<8x128xf32>
    %c56_172 = arith.constant 56 : index
    %682 = memref.load %arg4[%c56_172] : memref<64xf32, #tpu.memory_space<smem>>
    %683 = vector.broadcast %682 : f32 to vector<8x128xf32>
    %684 = arith.mulf %681, %683 : vector<8x128xf32>
    %685 = arith.addf %673, %684 : vector<8x128xf32>
    %c57 = arith.constant 57 : index
    %686 = memref.load %arg2[%c57] : memref<64xf32, #tpu.memory_space<smem>>
    %687 = vector.broadcast %686 : f32 to vector<8x128xf32>
    %688 = arith.mulf %0, %687 : vector<8x128xf32>
    %c57_173 = arith.constant 57 : index
    %689 = memref.load %arg3[%c57_173] : memref<64xf32, #tpu.memory_space<smem>>
    %690 = vector.broadcast %689 : f32 to vector<8x128xf32>
    %691 = arith.addf %688, %690 : vector<8x128xf32>
    %cst_174 = arith.constant 0.000000e+00 : f32
    %692 = vector.broadcast %cst_174 : f32 to vector<8x128xf32>
    %693 = arith.maximumf %691, %692 : vector<8x128xf32>
    %c57_175 = arith.constant 57 : index
    %694 = memref.load %arg4[%c57_175] : memref<64xf32, #tpu.memory_space<smem>>
    %695 = vector.broadcast %694 : f32 to vector<8x128xf32>
    %696 = arith.mulf %693, %695 : vector<8x128xf32>
    %697 = arith.addf %685, %696 : vector<8x128xf32>
    %c58 = arith.constant 58 : index
    %698 = memref.load %arg2[%c58] : memref<64xf32, #tpu.memory_space<smem>>
    %699 = vector.broadcast %698 : f32 to vector<8x128xf32>
    %700 = arith.mulf %0, %699 : vector<8x128xf32>
    %c58_176 = arith.constant 58 : index
    %701 = memref.load %arg3[%c58_176] : memref<64xf32, #tpu.memory_space<smem>>
    %702 = vector.broadcast %701 : f32 to vector<8x128xf32>
    %703 = arith.addf %700, %702 : vector<8x128xf32>
    %cst_177 = arith.constant 0.000000e+00 : f32
    %704 = vector.broadcast %cst_177 : f32 to vector<8x128xf32>
    %705 = arith.maximumf %703, %704 : vector<8x128xf32>
    %c58_178 = arith.constant 58 : index
    %706 = memref.load %arg4[%c58_178] : memref<64xf32, #tpu.memory_space<smem>>
    %707 = vector.broadcast %706 : f32 to vector<8x128xf32>
    %708 = arith.mulf %705, %707 : vector<8x128xf32>
    %709 = arith.addf %697, %708 : vector<8x128xf32>
    %c59 = arith.constant 59 : index
    %710 = memref.load %arg2[%c59] : memref<64xf32, #tpu.memory_space<smem>>
    %711 = vector.broadcast %710 : f32 to vector<8x128xf32>
    %712 = arith.mulf %0, %711 : vector<8x128xf32>
    %c59_179 = arith.constant 59 : index
    %713 = memref.load %arg3[%c59_179] : memref<64xf32, #tpu.memory_space<smem>>
    %714 = vector.broadcast %713 : f32 to vector<8x128xf32>
    %715 = arith.addf %712, %714 : vector<8x128xf32>
    %cst_180 = arith.constant 0.000000e+00 : f32
    %716 = vector.broadcast %cst_180 : f32 to vector<8x128xf32>
    %717 = arith.maximumf %715, %716 : vector<8x128xf32>
    %c59_181 = arith.constant 59 : index
    %718 = memref.load %arg4[%c59_181] : memref<64xf32, #tpu.memory_space<smem>>
    %719 = vector.broadcast %718 : f32 to vector<8x128xf32>
    %720 = arith.mulf %717, %719 : vector<8x128xf32>
    %721 = arith.addf %709, %720 : vector<8x128xf32>
    %c60 = arith.constant 60 : index
    %722 = memref.load %arg2[%c60] : memref<64xf32, #tpu.memory_space<smem>>
    %723 = vector.broadcast %722 : f32 to vector<8x128xf32>
    %724 = arith.mulf %0, %723 : vector<8x128xf32>
    %c60_182 = arith.constant 60 : index
    %725 = memref.load %arg3[%c60_182] : memref<64xf32, #tpu.memory_space<smem>>
    %726 = vector.broadcast %725 : f32 to vector<8x128xf32>
    %727 = arith.addf %724, %726 : vector<8x128xf32>
    %cst_183 = arith.constant 0.000000e+00 : f32
    %728 = vector.broadcast %cst_183 : f32 to vector<8x128xf32>
    %729 = arith.maximumf %727, %728 : vector<8x128xf32>
    %c60_184 = arith.constant 60 : index
    %730 = memref.load %arg4[%c60_184] : memref<64xf32, #tpu.memory_space<smem>>
    %731 = vector.broadcast %730 : f32 to vector<8x128xf32>
    %732 = arith.mulf %729, %731 : vector<8x128xf32>
    %733 = arith.addf %721, %732 : vector<8x128xf32>
    %c61 = arith.constant 61 : index
    %734 = memref.load %arg2[%c61] : memref<64xf32, #tpu.memory_space<smem>>
    %735 = vector.broadcast %734 : f32 to vector<8x128xf32>
    %736 = arith.mulf %0, %735 : vector<8x128xf32>
    %c61_185 = arith.constant 61 : index
    %737 = memref.load %arg3[%c61_185] : memref<64xf32, #tpu.memory_space<smem>>
    %738 = vector.broadcast %737 : f32 to vector<8x128xf32>
    %739 = arith.addf %736, %738 : vector<8x128xf32>
    %cst_186 = arith.constant 0.000000e+00 : f32
    %740 = vector.broadcast %cst_186 : f32 to vector<8x128xf32>
    %741 = arith.maximumf %739, %740 : vector<8x128xf32>
    %c61_187 = arith.constant 61 : index
    %742 = memref.load %arg4[%c61_187] : memref<64xf32, #tpu.memory_space<smem>>
    %743 = vector.broadcast %742 : f32 to vector<8x128xf32>
    %744 = arith.mulf %741, %743 : vector<8x128xf32>
    %745 = arith.addf %733, %744 : vector<8x128xf32>
    %c62 = arith.constant 62 : index
    %746 = memref.load %arg2[%c62] : memref<64xf32, #tpu.memory_space<smem>>
    %747 = vector.broadcast %746 : f32 to vector<8x128xf32>
    %748 = arith.mulf %0, %747 : vector<8x128xf32>
    %c62_188 = arith.constant 62 : index
    %749 = memref.load %arg3[%c62_188] : memref<64xf32, #tpu.memory_space<smem>>
    %750 = vector.broadcast %749 : f32 to vector<8x128xf32>
    %751 = arith.addf %748, %750 : vector<8x128xf32>
    %cst_189 = arith.constant 0.000000e+00 : f32
    %752 = vector.broadcast %cst_189 : f32 to vector<8x128xf32>
    %753 = arith.maximumf %751, %752 : vector<8x128xf32>
    %c62_190 = arith.constant 62 : index
    %754 = memref.load %arg4[%c62_190] : memref<64xf32, #tpu.memory_space<smem>>
    %755 = vector.broadcast %754 : f32 to vector<8x128xf32>
    %756 = arith.mulf %753, %755 : vector<8x128xf32>
    %757 = arith.addf %745, %756 : vector<8x128xf32>
    %c63 = arith.constant 63 : index
    %758 = memref.load %arg2[%c63] : memref<64xf32, #tpu.memory_space<smem>>
    %759 = vector.broadcast %758 : f32 to vector<8x128xf32>
    %760 = arith.mulf %0, %759 : vector<8x128xf32>
    %c63_191 = arith.constant 63 : index
    %761 = memref.load %arg3[%c63_191] : memref<64xf32, #tpu.memory_space<smem>>
    %762 = vector.broadcast %761 : f32 to vector<8x128xf32>
    %763 = arith.addf %760, %762 : vector<8x128xf32>
    %cst_192 = arith.constant 0.000000e+00 : f32
    %764 = vector.broadcast %cst_192 : f32 to vector<8x128xf32>
    %765 = arith.maximumf %763, %764 : vector<8x128xf32>
    %c63_193 = arith.constant 63 : index
    %766 = memref.load %arg4[%c63_193] : memref<64xf32, #tpu.memory_space<smem>>
    %767 = vector.broadcast %766 : f32 to vector<8x128xf32>
    %768 = arith.mulf %765, %767 : vector<8x128xf32>
    %769 = arith.addf %757, %768 : vector<8x128xf32>
    %c0_194 = arith.constant 0 : index
    %770 = memref.load %arg5[%c0_194] : memref<1xf32, #tpu.memory_space<smem>>
    %771 = vector.broadcast %770 : f32 to vector<8x128xf32>
    %772 = arith.addf %769, %771 : vector<8x128xf32>
    %c0_195 = arith.constant 0 : index
    %c0_196 = arith.constant 0 : index
    %773 = vector.load %arg7[%c0_195, %c0_196] : memref<8x128xf32, #tpu.memory_space<vmem>>, vector<8x128xf32>
    tpu.vector_store %arg7[%c0_195, %c0_196], %772 {strides = array<i32>} : memref<8x128xf32, #tpu.memory_space<vmem>>, vector<8x128xf32>,
    return
  }
  func.func @transform_0(%arg0: i32) -> i32 {
    %c0_i32 = arith.constant 0 : i32
    %c0_i32_0 = arith.constant 0 : i32
    return %c0_i32 : i32
  }
  func.func @transform_1(%arg0: i32) -> i32 {
    %c0_i32 = arith.constant 0 : i32
    %c0_i32_0 = arith.constant 0 : i32
    return %c0_i32 : i32
  }
  func.func @transform_2(%arg0: i32) -> i32 {
    %c0_i32 = arith.constant 0 : i32
    %c0_i32_0 = arith.constant 0 : i32
    return %c0_i32 : i32
  }
  func.func @transform_3(%arg0: i32) -> i32 {
    %c0_i32 = arith.constant 0 : i32
    %c0_i32_0 = arith.constant 0 : i32
    return %c0_i32 : i32
  }
  func.func @transform_4(%arg0: i32) -> i32 {
    %c0_i32 = arith.constant 0 : i32
    %c0_i32_0 = arith.constant 0 : i32
    return %c0_i32 : i32
  }
  func.func @transform_5(%arg0: i32) -> (i32, i32) {
    %c0_i32 = arith.constant 0 : i32
    %c0_i32_0 = arith.constant 0 : i32
    return %arg0, %c0_i32 : i32, i32
  }
  func.func @transform_6(%arg0: i32) -> (i32, i32) {
    %c0_i32 = arith.constant 0 : i32
    %c0_i32_0 = arith.constant 0 : i32
    return %arg0, %c0_i32 : i32, i32
  }
}

</mosaic_0001>

<bundles_post_ra>
// kernel: tpu_custom_call.1
= control target key start
LH: loop header
LB: loop body
LE: loop exit
PB: predicated region body
PF: predicated region fallthrough
CT: control target
= control target key end

     0   :  { %13 = vsyncpa [#allocation6], 0  ;;  %s1740_s0 = inlined_call_operand.<no memory space> [shape: s32[1], index: 0, kind: input, shape index: {}]   ;;  %s1741_s1 = inlined_call_operand.vmem [shape: f32[64], index: 1, kind: input, shape index: {}]   ;;  %s1742_s2 = inlined_call_operand.vmem [shape: f32[64], index: 2, kind: input, shape index: {}]   ;;  %s1743_s3 = inlined_call_operand.vmem [shape: f32[64], index: 3, kind: input, shape index: {}]   ;;  %s1744_s4 = inlined_call_operand.<no memory space> [shape: f32[1], index: 4, kind: input, shape index: {}]   ;;  %s1745_s5 = inlined_call_operand.vmem [shape: f32[8,128], index: 5, kind: input, shape index: {}]   ;;  %s1746_s6 = inlined_call_operand.hbm [shape: f32[8,128], index: 6, kind: output, shape index: {}]  }
   0x1   :  { %14 = vsyncpa [#allocation8], 0  ;;  %s34_s22 = sshll.u32 %s1742_s2, 4  ;;  %s35_s22 = int_to_ptr.vmem [resolvable:$true] %s34_s22 }
   0x2   :  { %15 = vsyncpa [#allocation5], 0  ;;  %s24_s25 = sshll.u32 %s1741_s1, 4  ;;  %s981_s26 = scalar_lea.vmem %s35_s22, 16  ;;  %s25_s25 = int_to_ptr.vmem [resolvable:$true] %s24_s25 }
   0x3   :  { %p982_p0 = scmp.ne.s32.totalorder %s35_s22, %s981_s26  ;;  %p986_p1 = scmp.lt.s32.totalorder %s35_s22, %s35_s22 }
   0x4   :  { %p987_p2 = scmp.lt.s32.totalorder %s981_s26, %s981_s26 }
   0x6   :  { %p988_p3 = por %p987_p2, %p986_p1 }
   0x8   :  { %p989_p4 = pnand %p988_p3, %p982_p0 }
   0xa   :  { %992 = shalt.err (!%p989_p4)
}
   0xb   :  { %s1045_s27 = smov [#allocation7]   ;;  %s993_s28 = scalar_lea.vmem %s25_s25, 16 }
   0xc   :  { %37 = dma.vmem_to_smem %s35_s22, 16, %s1045_s27, [#allocation8]  }
   0xd   :  { %p994_p5 = scmp.ne.s32.totalorder %s25_s25, %s993_s28  ;;  %p998_p6 = scmp.lt.s32.totalorder %s25_s25, %s25_s25 }
   0xe   :  { %p999_p7 = scmp.lt.s32.totalorder %s993_s28, %s993_s28 }
  0x10   :  { %p1000_p8 = por %p999_p7, %p998_p6 }
  0x12   :  { %p1001_p9 = pnand %p1000_p8, %p994_p5 }
  0x14   :  { %1004 = shalt.err (!%p1001_p9)
}
  0x15   :  { %s1046_s2 = smov [#allocation4]   ;;  %s44_s30 = sshll.u32 %s1743_s3, 4  ;;  %s45_s30 = int_to_ptr.vmem [resolvable:$true] %s44_s30 }
  0x16   :  { %27 = dma.vmem_to_smem %s25_s25, 16, %s1046_s2, [#allocation6]  }
  0x17   :  { %s1005_s7 = scalar_lea.vmem %s45_s30, 16  ;;  %p1010_p11 = scmp.lt.s32.totalorder %s45_s30, %s45_s30 }
  0x18   :  { %p1006_p10 = scmp.ne.s32.totalorder %s45_s30, %s1005_s7  ;;  %p1011_p12 = scmp.lt.s32.totalorder %s1005_s7, %s1005_s7 }
  0x1a   :  { %p1012_p13 = por %p1011_p12, %p1010_p11 }
  0x1c   :  { %p1013_p0 = pnand %p1012_p13, %p1006_p10 }
  0x1e   :  { %1016 = shalt.err (!%p1013_p0)
}
  0x1f   :  { %s1047_s8 = smov [#allocation9]  }
  0x20   :  { %47 = dma.vmem_to_smem %s45_s30, 16, %s1047_s8, [#allocation8]  }
  0x21   :  { %1039 = dma.done.wait [#allocation6], 16  }
  0x22   :  { %1040 = vsyncadd [#allocation6], 4294967280 }
  0x23   :  { %1041 = dma.done.wait [#allocation8], 32  }
  0x24   :  { %1042 = vsyncadd [#allocation8], 4294967264 }
  0x25   :  { %61 = sfence }
  0x26   :  { %s63_s9 = sld [smem:[#allocation4]]  ;;  %s787_s3 = sld [smem:[#allocation4 + $0x1]]  ;;  %v1102_v0 = vld [vmem:[%s1745_s5] sm:$0xff] }
  0x27   :  { %s66_s10 = sld [smem:[#allocation7]]  ;;  %s788_s12 = sld [smem:[#allocation7 + $0x1]] }
  0x28   :  { %s1093_s11 = sld [smem:[#allocation9]]  ;;  %s1095_s13 = sld [smem:[#allocation9 + $0x1]] }
  0x29   :  { %s790_s14 = sld [smem:[#allocation4 + $0x2]]  ;;  %s793_s19 = sld [smem:[#allocation4 + $0x3]] }
  0x2a   :  { %s1097_s15 = sld [smem:[#allocation7 + $0x2]]  ;;  %s1106_s20 = sld [smem:[#allocation7 + $0x3]] }
  0x2b   :  { %s1104_s18 = sld [smem:[#allocation9 + $0x2]]  ;;  %s1108_s0 = sld [smem:[#allocation9 + $0x3]] }
  0x2c   :  { %v64_v1 = vstv %s63_s9  ;;  %s1110_s21 = sld [smem:[#allocation4 + $0x4]]  ;;  %v75_v4 = vstv %s787_s3  ;;  %s1117_s24 = sld [smem:[#allocation4 + $0x5]] }
  0x2d   :  { %v67_v2 = vstv %s66_s10  ;;  %s1112_s22 = sld [smem:[#allocation7 + $0x4]]  ;;  %v65_v3 = vmul.f32 %v64_v1, %v1102_v0  ;;  %v76_v5 = vmul.f32 %v75_v4, %v1102_v0  ;;  %v78_v6 = vstv %s788_s12  ;;  %s1120_s25 = sld [smem:[#allocation7 + $0x5]] }
  0x2e   :  { %s1115_s23 = sld [smem:[#allocation9 + $0x4]]  ;;  %v71_v8 = vstv %s1093_s11  ;;  %s1124_s26 = sld [smem:[#allocation4 + $0x6]]  ;;  %v82_v12 = vstv %s1095_s13 }
  0x2f   :  { %v68_v7 = vadd.f32 %v67_v2, %v65_v3  ;;  %v86_v9 = vstv %s790_s14  ;;  %s1126_s27 = sld [smem:[#allocation7 + $0x6]]  ;;  %v79_v11 = vadd.f32 %v78_v6, %v76_v5  ;;  %v97_v14 = vstv %s793_s19  ;;  %s1130_s28 = sld [smem:[#allocation9 + $0x5]] }
  0x30   :  { %v89_v10 = vstv %s1097_s15  ;;  %v87_v13 = vmul.f32 %v86_v9, %v1102_v0  ;;  %s1132_s2 = sld [smem:[#allocation4 + $0x7]]  ;;  %v98_v17 = vmul.f32 %v97_v14, %v1102_v0  ;;  %v100_v18 = vstv %s1106_s20  ;;  %s1137_s1 = sld [smem:[#allocation9 + $0x6]] }
  0x31   :  { %v69_v15 = vmax.f32 %v68_v7, 0.0  ;;  %v93_v16 = vstv %s1104_s18  ;;  %s1139_s29 = sld [smem:[#allocation7 + $0x7]]  ;;  %v80_v19 = vmax.f32 %v79_v11, 0.0  ;;  %s1143_s30 = sld [smem:[#allocation4 + $0x8]]  ;;  %v104_v25 = vstv %s1108_s0 }
  0x32   :  { %v90_v20 = vadd.f32 %v89_v10, %v87_v13  ;;  %v108_v21 = vstv %s1110_s21  ;;  %s1145_s7 = sld [smem:[#allocation7 + $0x8]]  ;;  %v101_v24 = vadd.f32 %v100_v18, %v98_v17  ;;  %s1149_s8 = sld [smem:[#allocation9 + $0x7]]  ;;  %v119_v29 = vstv %s1117_s24 }
  0x33   :  { %v111_v22 = vstv %s1112_s22  ;;  %v72_v23 = vmul.f32 %v71_v8, %v69_v15  ;;  %v109_v26 = vmul.f32 %v108_v21, %v1102_v0  ;;  %v83_v27 = vmul.f32 %v82_v12, %v80_v19  ;;  %s1153_s9 = sld [smem:[#allocation4 + $0x9]]  ;;  %s1159_s11 = sld [smem:[#allocation9 + $0x8]] }
  0x34   :  { %v91_v28 = vmax.f32 %v90_v20, 0.0  ;;  %v122_v30 = vstv %s1120_s25  ;;  %s1155_s10 = sld [smem:[#allocation7 + $0x9]]  ;;  %v102_v31 = vmax.f32 %v101_v24, 0.0  ;;  %v115_v33 = vstv %s1115_s23  ;;  %s1163_s3 = sld [smem:[#allocation4 + $0xa]] }
  0x35   :  { %v112_v32 = vadd.f32 %v111_v22, %v109_v26  ;;  %v120_v34 = vmul.f32 %v119_v29, %v1102_v0  ;;  %v84_v35 = vadd.f32 %v83_v27, %v72_v23  ;;  %v130_v37 = vstv %s1124_s26  ;;  %s1165_s12 = sld [smem:[#allocation7 + $0xa]]  ;;  %s1168_s13 = sld [smem:[#allocation9 + $0x9]] }
  0x36   :  { %v94_v36 = vmul.f32 %v93_v16, %v91_v28  ;;  %v133_v38 = vstv %s1126_s27  ;;  %v105_v39 = vmul.f32 %v104_v25, %v102_v31  ;;  %v131_v42 = vmul.f32 %v130_v37, %v1102_v0  ;;  %s1173_s14 = sld [smem:[#allocation4 + $0xb]]  ;;  %s1178_s16 = sld [smem:[#allocation9 + $0xa]] }
  0x37   :  { %v113_v40 = vmax.f32 %v112_v32, 0.0  ;;  %v123_v41 = vadd.f32 %v122_v30, %v120_v34  ;;  %v126_v44 = vstv %s1130_s28  ;;  %v141_v45 = vstv %s1132_s2  ;;  %s1175_s15 = sld [smem:[#allocation7 + $0xb]]  ;;  %s1183_s17 = sld [smem:[#allocation4 + $0xc]] }
  0x38   :  { %v95_v43 = vadd.f32 %v94_v36, %v84_v35  ;;  %v144_v46 = vstv %s1139_s29  ;;  %v134_v49 = vadd.f32 %v133_v38, %v131_v42  ;;  %v142_v50 = vmul.f32 %v141_v45, %v1102_v0  ;;  %s1185_s18 = sld [smem:[#allocation7 + $0xc]]  ;;  %s1188_s19 = sld [smem:[#allocation9 + $0xb]] }
  0x39   :  { %v116_v47 = vmul.f32 %v115_v33, %v113_v40  ;;  %v124_v48 = vmax.f32 %v123_v41, 0.0  ;;  %v137_v52 = vstv %s1137_s1  ;;  %v152_v53 = vstv %s1143_s30  ;;  %s1193_s20 = sld [smem:[#allocation4 + $0xd]]  ;;  %s1198_s21 = sld [smem:[#allocation9 + $0xc]] }
  0x3a   :  { %v106_v51 = vadd.f32 %v105_v39, %v95_v43  ;;  %v155_v54 = vstv %s1145_s7  ;;  %v135_v56 = vmax.f32 %v134_v49, 0.0  ;;  %v145_v57 = vadd.f32 %v144_v46, %v142_v50  ;;  %s1195_s0 = sld [smem:[#allocation7 + $0xd]]  ;;  %s1203_s22 = sld [smem:[#allocation4 + $0xe]] }
  0x3b   :  { %v127_v55 = vmul.f32 %v126_v44, %v124_v48  ;;  %v153_v58 = vmul.f32 %v152_v53, %v1102_v0  ;;  %v148_v60 = vstv %s1149_s8  ;;  %v163_v61 = vstv %s1153_s9  ;;  %s1205_s23 = sld [smem:[#allocation7 + $0xe]]  ;;  %s1208_s24 = sld [smem:[#allocation9 + $0xd]] }
  0x3c   :  { %v117_v59 = vadd.f32 %v116_v47, %v106_v51  ;;  %v166_v62 = vstv %s1155_s10  ;;  %v138_v63 = vmul.f32 %v137_v52, %v135_v56  ;;  %v146_v1 = vmax.f32 %v145_v57, 0.0  ;;  %s1213_s25 = sld [smem:[#allocation4 + $0xf]]  ;;  %s1218_s27 = sld [smem:[#allocation9 + $0xe]] }
  0x3d   :  { %v156_v2 = vadd.f32 %v155_v54, %v153_v58  ;;  %v164_v3 = vmul.f32 %v163_v61, %v1102_v0  ;;  %v159_v5 = vstv %s1159_s11  ;;  %v174_v6 = vstv %s1163_s3  ;;  %s1215_s26 = sld [smem:[#allocation7 + $0xf]]  ;;  %s1223_s28 = sld [smem:[#allocation4 + $0x10]] }
  0x3e   :  { %v128_v4 = vadd.f32 %v127_v55, %v117_v59  ;;  %v177_v7 = vstv %s1165_s12  ;;  %v149_v8 = vmul.f32 %v148_v60, %v146_v1  ;;  %v175_v11 = vmul.f32 %v174_v6, %v1102_v0  ;;  %s1225_s2 = sld [smem:[#allocation7 + $0x10]]  ;;  %s1228_s1 = sld [smem:[#allocation9 + $0xf]] }
  0x3f   :  { %v157_v9 = vmax.f32 %v156_v2, 0.0  ;;  %v167_v10 = vadd.f32 %v166_v62, %v164_v3  ;;  %v170_v13 = vstv %s1168_s13  ;;  %v185_v14 = vstv %s1173_s14  ;;  %s1233_s29 = sld [smem:[#allocation4 + $0x11]]  ;;  %s1238_s7 = sld [smem:[#allocation9 + $0x10]] }
  0x40   :  { %v139_v12 = vadd.f32 %v138_v63, %v128_v4  ;;  %v188_v15 = vstv %s1175_s15  ;;  %v178_v18 = vadd.f32 %v177_v7, %v175_v11  ;;  %v186_v19 = vmul.f32 %v185_v14, %v1102_v0  ;;  %s1235_s30 = sld [smem:[#allocation7 + $0x11]]  ;;  %s1243_s8 = sld [smem:[#allocation4 + $0x12]] }
  0x41   :  { %v160_v16 = vmul.f32 %v159_v5, %v157_v9  ;;  %v168_v17 = vmax.f32 %v167_v10, 0.0  ;;  %v181_v21 = vstv %s1178_s16  ;;  %v196_v22 = vstv %s1183_s17  ;;  %s1245_s9 = sld [smem:[#allocation7 + $0x12]]  ;;  %s1248_s10 = sld [smem:[#allocation9 + $0x11]] }
  0x42   :  { %v150_v20 = vadd.f32 %v149_v8, %v139_v12  ;;  %v199_v23 = vstv %s1185_s18  ;;  %v179_v25 = vmax.f32 %v178_v18, 0.0  ;;  %v189_v26 = vadd.f32 %v188_v15, %v186_v19  ;;  %s1253_s11 = sld [smem:[#allocation4 + $0x13]]  ;;  %s1258_s12 = sld [smem:[#allocation9 + $0x12]] }
  0x43   :  { %v171_v24 = vmul.f32 %v170_v13, %v168_v17  ;;  %v197_v27 = vmul.f32 %v196_v22, %v1102_v0  ;;  %v192_v29 = vstv %s1188_s19  ;;  %v207_v30 = vstv %s1193_s20  ;;  %s1255_s3 = sld [smem:[#allocation7 + $0x13]]  ;;  %s1263_s13 = sld [smem:[#allocation4 + $0x14]] }
  0x44   :  { %v161_v28 = vadd.f32 %v160_v16, %v150_v20  ;;  %v210_v31 = vstv %s1195_s0  ;;  %v182_v32 = vmul.f32 %v181_v21, %v179_v25  ;;  %v190_v33 = vmax.f32 %v189_v26, 0.0  ;;  %s1265_s14 = sld [smem:[#allocation7 + $0x14]]  ;;  %s1268_s15 = sld [smem:[#allocation9 + $0x13]] }
  0x45   :  { %v200_v34 = vadd.f32 %v199_v23, %v197_v27  ;;  %v208_v35 = vmul.f32 %v207_v30, %v1102_v0  ;;  %v203_v37 = vstv %s1198_s21  ;;  %v218_v38 = vstv %s1203_s22  ;;  %s1273_s16 = sld [smem:[#allocation4 + $0x15]]  ;;  %s1278_s18 = sld [smem:[#allocation9 + $0x14]] }
  0x46   :  { %v172_v36 = vadd.f32 %v171_v24, %v161_v28  ;;  %v221_v39 = vstv %s1205_s23  ;;  %v193_v40 = vmul.f32 %v192_v29, %v190_v33  ;;  %v219_v43 = vmul.f32 %v218_v38, %v1102_v0  ;;  %s1275_s17 = sld [smem:[#allocation7 + $0x15]]  ;;  %s1283_s19 = sld [smem:[#allocation4 + $0x16]] }
  0x47   :  { %v201_v41 = vmax.f32 %v200_v34, 0.0  ;;  %v211_v42 = vadd.f32 %v210_v31, %v208_v35  ;;  %v214_v45 = vstv %s1208_s24  ;;  %v229_v46 = vstv %s1213_s25  ;;  %s1285_s20 = sld [smem:[#allocation7 + $0x16]]  ;;  %s1288_s0 = sld [smem:[#allocation9 + $0x15]] }
  0x48   :  { %v183_v44 = vadd.f32 %v182_v32, %v172_v36  ;;  %v232_v47 = vstv %s1215_s26  ;;  %v222_v50 = vadd.f32 %v221_v39, %v219_v43  ;;  %v230_v51 = vmul.f32 %v229_v46, %v1102_v0  ;;  %s1293_s21 = sld [smem:[#allocation4 + $0x17]]  ;;  %s1298_s23 = sld [smem:[#allocation9 + $0x16]] }
  0x49   :  { %v204_v48 = vmul.f32 %v203_v37, %v201_v41  ;;  %v212_v49 = vmax.f32 %v211_v42, 0.0  ;;  %v225_v53 = vstv %s1218_s27  ;;  %v240_v54 = vstv %s1223_s28  ;;  %s1295_s22 = sld [smem:[#allocation7 + $0x17]]  ;;  %s1303_s24 = sld [smem:[#allocation4 + $0x18]] }
  0x4a   :  { %v194_v52 = vadd.f32 %v193_v40, %v183_v44  ;;  %v243_v55 = vstv %s1225_s2  ;;  %v223_v57 = vmax.f32 %v222_v50, 0.0  ;;  %v233_v58 = vadd.f32 %v232_v47, %v230_v51  ;;  %s1305_s25 = sld [smem:[#allocation7 + $0x18]]  ;;  %s1308_s26 = sld [smem:[#allocation9 + $0x17]] }
  0x4b   :  { %v215_v56 = vmul.f32 %v214_v45, %v212_v49  ;;  %v241_v59 = vmul.f32 %v240_v54, %v1102_v0  ;;  %v236_v61 = vstv %s1228_s1  ;;  %v251_v62 = vstv %s1233_s29  ;;  %s1313_s27 = sld [smem:[#allocation4 + $0x19]]  ;;  %s1318_s2 = sld [smem:[#allocation9 + $0x18]] }
  0x4c   :  { %v205_v60 = vadd.f32 %v204_v48, %v194_v52  ;;  %v254_v63 = vstv %s1235_s30  ;;  %v226_v1 = vmul.f32 %v225_v53, %v223_v57  ;;  %v234_v2 = vmax.f32 %v233_v58, 0.0  ;;  %s1315_s28 = sld [smem:[#allocation7 + $0x19]]  ;;  %s1323_s1 = sld [smem:[#allocation4 + $0x1a]] }
  0x4d   :  { %v244_v3 = vadd.f32 %v243_v55, %v241_v59  ;;  %v252_v4 = vmul.f32 %v251_v62, %v1102_v0  ;;  %v247_v6 = vstv %s1238_s7  ;;  %v262_v7 = vstv %s1243_s8  ;;  %s1325_s29 = sld [smem:[#allocation7 + $0x1a]]  ;;  %s1328_s30 = sld [smem:[#allocation9 + $0x19]] }
  0x4e   :  { %v216_v5 = vadd.f32 %v215_v56, %v205_v60  ;;  %v265_v8 = vstv %s1245_s9  ;;  %v237_v9 = vmul.f32 %v236_v61, %v234_v2  ;;  %v263_v12 = vmul.f32 %v262_v7, %v1102_v0  ;;  %s1333_s7 = sld [smem:[#allocation4 + $0x1b]]  ;;  %s1338_s9 = sld [smem:[#allocation9 + $0x1a]] }
  0x4f   :  { %v245_v10 = vmax.f32 %v244_v3, 0.0  ;;  %v255_v11 = vadd.f32 %v254_v63, %v252_v4  ;;  %v258_v14 = vstv %s1248_s10  ;;  %v273_v15 = vstv %s1253_s11  ;;  %s1335_s8 = sld [smem:[#allocation7 + $0x1b]]  ;;  %s1343_s10 = sld [smem:[#allocation4 + $0x1c]] }
  0x50   :  { %v227_v13 = vadd.f32 %v226_v1, %v216_v5  ;;  %v276_v16 = vstv %s1255_s3  ;;  %v266_v19 = vadd.f32 %v265_v8, %v263_v12  ;;  %v274_v20 = vmul.f32 %v273_v15, %v1102_v0  ;;  %s1345_s11 = sld [smem:[#allocation7 + $0x1c]]  ;;  %s1348_s3 = sld [smem:[#allocation9 + $0x1b]] }
  0x51   :  { %v248_v17 = vmul.f32 %v247_v6, %v245_v10  ;;  %v256_v18 = vmax.f32 %v255_v11, 0.0  ;;  %v269_v22 = vstv %s1258_s12  ;;  %v284_v23 = vstv %s1263_s13  ;;  %s1353_s12 = sld [smem:[#allocation4 + $0x1d]] }
  0x52   :  { %v238_v21 = vadd.f32 %v237_v9, %v227_v13  ;;  %v287_v24 = vstv %s1265_s14  ;;  %v267_v26 = vmax.f32 %v266_v19, 0.0  ;;  %v277_v27 = vadd.f32 %v276_v16, %v274_v20  ;;  %s1355_s13 = sld [smem:[#allocation7 + $0x1d]]  ;;  %s1358_s14 = sld [smem:[#allocation9 + $0x1c]] }
  0x53   :  { %v259_v25 = vmul.f32 %v258_v14, %v256_v18  ;;  %v285_v28 = vmul.f32 %v284_v23, %v1102_v0  ;;  %v280_v30 = vstv %s1268_s15  ;;  %v295_v31 = vstv %s1273_s16  ;;  %s1363_s15 = sld [smem:[#allocation4 + $0x1e]] }
  0x54   :  { %v249_v29 = vadd.f32 %v248_v17, %v238_v21  ;;  %v298_v32 = vstv %s1275_s17  ;;  %v270_v33 = vmul.f32 %v269_v22, %v267_v26  ;;  %v278_v34 = vmax.f32 %v277_v27, 0.0  ;;  %s1365_s16 = sld [smem:[#allocation7 + $0x1e]]  ;;  %s1368_s17 = sld [smem:[#allocation9 + $0x1d]] }
  0x55   :  { %v288_v35 = vadd.f32 %v287_v24, %v285_v28  ;;  %v296_v36 = vmul.f32 %v295_v31, %v1102_v0  ;;  %v291_v38 = vstv %s1278_s18  ;;  %v306_v39 = vstv %s1283_s19  ;;  %s1373_s18 = sld [smem:[#allocation4 + $0x1f]] }
  0x56   :  { %v260_v37 = vadd.f32 %v259_v25, %v249_v29  ;;  %v309_v40 = vstv %s1285_s20  ;;  %v281_v41 = vmul.f32 %v280_v30, %v278_v34  ;;  %v307_v44 = vmul.f32 %v306_v39, %v1102_v0  ;;  %s1375_s19 = sld [smem:[#allocation7 + $0x1f]]  ;;  %s1378_s20 = sld [smem:[#allocation9 + $0x1e]] }
  0x57   :  { %v289_v42 = vmax.f32 %v288_v35, 0.0  ;;  %v299_v43 = vadd.f32 %v298_v32, %v296_v36  ;;  %v302_v46 = vstv %s1288_s0  ;;  %v317_v47 = vstv %s1293_s21  ;;  %s1383_s0 = sld [smem:[#allocation4 + $0x20]] }
  0x58   :  { %v271_v45 = vadd.f32 %v270_v33, %v260_v37  ;;  %v320_v48 = vstv %s1295_s22  ;;  %v310_v51 = vadd.f32 %v309_v40, %v307_v44  ;;  %v318_v52 = vmul.f32 %v317_v47, %v1102_v0  ;;  %s1385_s21 = sld [smem:[#allocation7 + $0x20]]  ;;  %s1388_s22 = sld [smem:[#allocation9 + $0x1f]] }
  0x59   :  { %v292_v49 = vmul.f32 %v291_v38, %v289_v42  ;;  %v300_v50 = vmax.f32 %v299_v43, 0.0  ;;  %v313_v54 = vstv %s1298_s23  ;;  %v328_v55 = vstv %s1303_s24  ;;  %s1393_s23 = sld [smem:[#allocation4 + $0x21]] }
  0x5a   :  { %v282_v53 = vadd.f32 %v281_v41, %v271_v45  ;;  %v331_v56 = vstv %s1305_s25  ;;  %v311_v58 = vmax.f32 %v310_v51, 0.0  ;;  %v321_v59 = vadd.f32 %v320_v48, %v318_v52  ;;  %s1395_s24 = sld [smem:[#allocation7 + $0x21]]  ;;  %s1398_s25 = sld [smem:[#allocation9 + $0x20]] }
  0x5b   :  { %v303_v57 = vmul.f32 %v302_v46, %v300_v50  ;;  %v329_v60 = vmul.f32 %v328_v55, %v1102_v0  ;;  %v324_v62 = vstv %s1308_s26  ;;  %v339_v63 = vstv %s1313_s27  ;;  %s1403_s26 = sld [smem:[#allocation4 + $0x22]] }
  0x5c   :  { %v293_v61 = vadd.f32 %v292_v49, %v282_v53  ;;  %v342_v1 = vstv %s1315_s28  ;;  %v314_v2 = vmul.f32 %v313_v54, %v311_v58  ;;  %v322_v3 = vmax.f32 %v321_v59, 0.0  ;;  %s1405_s27 = sld [smem:[#allocation7 + $0x22]]  ;;  %s1408_s28 = sld [smem:[#allocation9 + $0x21]] }
  0x5d   :  { %v332_v4 = vadd.f32 %v331_v56, %v329_v60  ;;  %v340_v5 = vmul.f32 %v339_v63, %v1102_v0  ;;  %v335_v7 = vstv %s1318_s2  ;;  %v350_v8 = vstv %s1323_s1  ;;  %s1413_s2 = sld [smem:[#allocation4 + $0x23]] }
  0x5e   :  { %v304_v6 = vadd.f32 %v303_v57, %v293_v61  ;;  %v353_v9 = vstv %s1325_s29  ;;  %v325_v10 = vmul.f32 %v324_v62, %v322_v3  ;;  %v351_v13 = vmul.f32 %v350_v8, %v1102_v0  ;;  %s1415_s1 = sld [smem:[#allocation7 + $0x23]]  ;;  %s1418_s29 = sld [smem:[#allocation9 + $0x22]] }
  0x5f   :  { %v333_v11 = vmax.f32 %v332_v4, 0.0  ;;  %v343_v12 = vadd.f32 %v342_v1, %v340_v5  ;;  %v346_v15 = vstv %s1328_s30  ;;  %v361_v16 = vstv %s1333_s7  ;;  %s1423_s30 = sld [smem:[#allocation4 + $0x24]] }
  0x60   :  { %v315_v14 = vadd.f32 %v314_v2, %v304_v6  ;;  %v364_v17 = vstv %s1335_s8  ;;  %v354_v20 = vadd.f32 %v353_v9, %v351_v13  ;;  %v362_v21 = vmul.f32 %v361_v16, %v1102_v0  ;;  %s1425_s7 = sld [smem:[#allocation7 + $0x24]]  ;;  %s1428_s8 = sld [smem:[#allocation9 + $0x23]] }
  0x61   :  { %v336_v18 = vmul.f32 %v335_v7, %v333_v11  ;;  %v344_v19 = vmax.f32 %v343_v12, 0.0  ;;  %v357_v23 = vstv %s1338_s9  ;;  %v372_v24 = vstv %s1343_s10  ;;  %s1433_s9 = sld [smem:[#allocation4 + $0x25]] }
  0x62   :  { %v326_v22 = vadd.f32 %v325_v10, %v315_v14  ;;  %v375_v25 = vstv %s1345_s11  ;;  %v355_v27 = vmax.f32 %v354_v20, 0.0  ;;  %v365_v28 = vadd.f32 %v364_v17, %v362_v21  ;;  %s1435_s10 = sld [smem:[#allocation7 + $0x25]]  ;;  %s1438_s11 = sld [smem:[#allocation9 + $0x24]] }
  0x63   :  { %v347_v26 = vmul.f32 %v346_v15, %v344_v19  ;;  %v373_v29 = vmul.f32 %v372_v24, %v1102_v0  ;;  %v368_v31 = vstv %s1348_s3  ;;  %v383_v32 = vstv %s1353_s12  ;;  %s1443_s3 = sld [smem:[#allocation4 + $0x26]] }
  0x64   :  { %v337_v30 = vadd.f32 %v336_v18, %v326_v22  ;;  %v386_v33 = vstv %s1355_s13  ;;  %v358_v34 = vmul.f32 %v357_v23, %v355_v27  ;;  %v366_v35 = vmax.f32 %v365_v28, 0.0  ;;  %s1445_s12 = sld [smem:[#allocation7 + $0x26]]  ;;  %s1448_s13 = sld [smem:[#allocation9 + $0x25]] }
  0x65   :  { %v376_v36 = vadd.f32 %v375_v25, %v373_v29  ;;  %v384_v37 = vmul.f32 %v383_v32, %v1102_v0  ;;  %v379_v39 = vstv %s1358_s14  ;;  %v394_v40 = vstv %s1363_s15  ;;  %s1453_s14 = sld [smem:[#allocation4 + $0x27]] }
  0x66   :  { %v348_v38 = vadd.f32 %v347_v26, %v337_v30  ;;  %v397_v41 = vstv %s1365_s16  ;;  %v369_v42 = vmul.f32 %v368_v31, %v366_v35  ;;  %v395_v45 = vmul.f32 %v394_v40, %v1102_v0  ;;  %s1455_s15 = sld [smem:[#allocation7 + $0x27]]  ;;  %s1458_s16 = sld [smem:[#allocation9 + $0x26]] }
  0x67   :  { %v377_v43 = vmax.f32 %v376_v36, 0.0  ;;  %v387_v44 = vadd.f32 %v386_v33, %v384_v37  ;;  %v390_v47 = vstv %s1368_s17  ;;  %v405_v48 = vstv %s1373_s18  ;;  %s1463_s17 = sld [smem:[#allocation4 + $0x28]] }
  0x68   :  { %v359_v46 = vadd.f32 %v358_v34, %v348_v38  ;;  %v408_v49 = vstv %s1375_s19  ;;  %v398_v52 = vadd.f32 %v397_v41, %v395_v45  ;;  %v406_v53 = vmul.f32 %v405_v48, %v1102_v0  ;;  %s1465_s18 = sld [smem:[#allocation7 + $0x28]]  ;;  %s1468_s19 = sld [smem:[#allocation9 + $0x27]] }
  0x69   :  { %v380_v50 = vmul.f32 %v379_v39, %v377_v43  ;;  %v388_v51 = vmax.f32 %v387_v44, 0.0  ;;  %v401_v55 = vstv %s1378_s20  ;;  %v416_v56 = vstv %s1383_s0  ;;  %s1473_s20 = sld [smem:[#allocation4 + $0x29]] }
  0x6a   :  { %v370_v54 = vadd.f32 %v369_v42, %v359_v46  ;;  %v419_v57 = vstv %s1385_s21  ;;  %v399_v59 = vmax.f32 %v398_v52, 0.0  ;;  %v409_v60 = vadd.f32 %v408_v49, %v406_v53  ;;  %s1475_s0 = sld [smem:[#allocation7 + $0x29]]  ;;  %s1478_s21 = sld [smem:[#allocation9 + $0x28]] }
  0x6b   :  { %v391_v58 = vmul.f32 %v390_v47, %v388_v51  ;;  %v417_v61 = vmul.f32 %v416_v56, %v1102_v0  ;;  %v412_v63 = vstv %s1388_s22  ;;  %v427_v1 = vstv %s1393_s23  ;;  %s1483_s22 = sld [smem:[#allocation4 + $0x2a]] }
  0x6c   :  { %v381_v62 = vadd.f32 %v380_v50, %v370_v54  ;;  %v430_v2 = vstv %s1395_s24  ;;  %v402_v3 = vmul.f32 %v401_v55, %v399_v59  ;;  %v410_v4 = vmax.f32 %v409_v60, 0.0  ;;  %s1485_s23 = sld [smem:[#allocation7 + $0x2a]]  ;;  %s1488_s24 = sld [smem:[#allocation9 + $0x29]] }
  0x6d   :  { %v420_v5 = vadd.f32 %v419_v57, %v417_v61  ;;  %v428_v6 = vmul.f32 %v427_v1, %v1102_v0  ;;  %v423_v8 = vstv %s1398_s25  ;;  %v438_v9 = vstv %s1403_s26  ;;  %s1493_s25 = sld [smem:[#allocation4 + $0x2b]] }
  0x6e   :  { %v392_v7 = vadd.f32 %v391_v58, %v381_v62  ;;  %v441_v10 = vstv %s1405_s27  ;;  %v413_v11 = vmul.f32 %v412_v63, %v410_v4  ;;  %v439_v14 = vmul.f32 %v438_v9, %v1102_v0  ;;  %s1495_s26 = sld [smem:[#allocation7 + $0x2b]]  ;;  %s1498_s27 = sld [smem:[#allocation9 + $0x2a]] }
  0x6f   :  { %v421_v12 = vmax.f32 %v420_v5, 0.0  ;;  %v431_v13 = vadd.f32 %v430_v2, %v428_v6  ;;  %v434_v16 = vstv %s1408_s28  ;;  %v449_v17 = vstv %s1413_s2  ;;  %s1503_s28 = sld [smem:[#allocation4 + $0x2c]] }
  0x70   :  { %v403_v15 = vadd.f32 %v402_v3, %v392_v7  ;;  %v452_v18 = vstv %s1415_s1  ;;  %v442_v21 = vadd.f32 %v441_v10, %v439_v14  ;;  %v450_v22 = vmul.f32 %v449_v17, %v1102_v0  ;;  %s1505_s2 = sld [smem:[#allocation7 + $0x2c]]  ;;  %s1508_s1 = sld [smem:[#allocation9 + $0x2b]] }
  0x71   :  { %v424_v19 = vmul.f32 %v423_v8, %v421_v12  ;;  %v432_v20 = vmax.f32 %v431_v13, 0.0  ;;  %v445_v24 = vstv %s1418_s29  ;;  %v460_v25 = vstv %s1423_s30  ;;  %s1513_s29 = sld [smem:[#allocation4 + $0x2d]] }
  0x72   :  { %v414_v23 = vadd.f32 %v413_v11, %v403_v15  ;;  %v463_v26 = vstv %s1425_s7  ;;  %v443_v28 = vmax.f32 %v442_v21, 0.0  ;;  %v453_v29 = vadd.f32 %v452_v18, %v450_v22  ;;  %s1515_s30 = sld [smem:[#allocation7 + $0x2d]]  ;;  %s1518_s7 = sld [smem:[#allocation9 + $0x2c]] }
  0x73   :  { %v435_v27 = vmul.f32 %v434_v16, %v432_v20  ;;  %v461_v30 = vmul.f32 %v460_v25, %v1102_v0  ;;  %v456_v32 = vstv %s1428_s8  ;;  %v471_v33 = vstv %s1433_s9  ;;  %s1523_s8 = sld [smem:[#allocation4 + $0x2e]] }
  0x74   :  { %v425_v31 = vadd.f32 %v424_v19, %v414_v23  ;;  %v474_v34 = vstv %s1435_s10  ;;  %v446_v35 = vmul.f32 %v445_v24, %v443_v28  ;;  %v454_v36 = vmax.f32 %v453_v29, 0.0  ;;  %s1525_s9 = sld [smem:[#allocation7 + $0x2e]]  ;;  %s1528_s10 = sld [smem:[#allocation9 + $0x2d]] }
  0x75   :  { %v464_v37 = vadd.f32 %v463_v26, %v461_v30  ;;  %v472_v38 = vmul.f32 %v471_v33, %v1102_v0  ;;  %v467_v40 = vstv %s1438_s11  ;;  %v482_v41 = vstv %s1443_s3  ;;  %s1533_s11 = sld [smem:[#allocation4 + $0x2f]] }
  0x76   :  { %v436_v39 = vadd.f32 %v435_v27, %v425_v31  ;;  %v485_v42 = vstv %s1445_s12  ;;  %v457_v43 = vmul.f32 %v456_v32, %v454_v36  ;;  %v483_v46 = vmul.f32 %v482_v41, %v1102_v0  ;;  %s1535_s3 = sld [smem:[#allocation7 + $0x2f]]  ;;  %s1538_s12 = sld [smem:[#allocation9 + $0x2e]] }
  0x77   :  { %v465_v44 = vmax.f32 %v464_v37, 0.0  ;;  %v475_v45 = vadd.f32 %v474_v34, %v472_v38  ;;  %v478_v48 = vstv %s1448_s13  ;;  %v493_v49 = vstv %s1453_s14  ;;  %s1543_s13 = sld [smem:[#allocation4 + $0x30]] }
  0x78   :  { %v447_v47 = vadd.f32 %v446_v35, %v436_v39  ;;  %v496_v50 = vstv %s1455_s15  ;;  %v486_v53 = vadd.f32 %v485_v42, %v483_v46  ;;  %v494_v54 = vmul.f32 %v493_v49, %v1102_v0  ;;  %s1545_s14 = sld [smem:[#allocation7 + $0x30]]  ;;  %s1548_s15 = sld [smem:[#allocation9 + $0x2f]] }
  0x79   :  { %v468_v51 = vmul.f32 %v467_v40, %v465_v44  ;;  %v476_v52 = vmax.f32 %v475_v45, 0.0  ;;  %v489_v56 = vstv %s1458_s16  ;;  %v504_v57 = vstv %s1463_s17  ;;  %s1553_s16 = sld [smem:[#allocation4 + $0x31]] }
  0x7a   :  { %v458_v55 = vadd.f32 %v457_v43, %v447_v47  ;;  %v507_v58 = vstv %s1465_s18  ;;  %v487_v60 = vmax.f32 %v486_v53, 0.0  ;;  %v497_v61 = vadd.f32 %v496_v50, %v494_v54  ;;  %s1555_s17 = sld [smem:[#allocation7 + $0x31]]  ;;  %s1558_s18 = sld [smem:[#allocation9 + $0x30]] }
  0x7b   :  { %v479_v59 = vmul.f32 %v478_v48, %v476_v52  ;;  %v505_v62 = vmul.f32 %v504_v57, %v1102_v0  ;;  %v500_v1 = vstv %s1468_s19  ;;  %v515_v2 = vstv %s1473_s20  ;;  %s1563_s19 = sld [smem:[#allocation4 + $0x32]] }
  0x7c   :  { %v469_v63 = vadd.f32 %v468_v51, %v458_v55  ;;  %v518_v3 = vstv %s1475_s0  ;;  %v490_v4 = vmul.f32 %v489_v56, %v487_v60  ;;  %v498_v5 = vmax.f32 %v497_v61, 0.0  ;;  %s1565_s20 = sld [smem:[#allocation7 + $0x32]]  ;;  %s1568_s0 = sld [smem:[#allocation9 + $0x31]] }
  0x7d   :  { %v508_v6 = vadd.f32 %v507_v58, %v505_v62  ;;  %v516_v7 = vmul.f32 %v515_v2, %v1102_v0  ;;  %v511_v9 = vstv %s1478_s21  ;;  %v526_v10 = vstv %s1483_s22  ;;  %s1573_s21 = sld [smem:[#allocation4 + $0x33]] }
  0x7e   :  { %v480_v8 = vadd.f32 %v479_v59, %v469_v63  ;;  %v529_v11 = vstv %s1485_s23  ;;  %v501_v12 = vmul.f32 %v500_v1, %v498_v5  ;;  %v527_v15 = vmul.f32 %v526_v10, %v1102_v0  ;;  %s1575_s22 = sld [smem:[#allocation7 + $0x33]] }
  0x7f   :  { %v509_v13 = vmax.f32 %v508_v6, 0.0  ;;  %v519_v14 = vadd.f32 %v518_v3, %v516_v7  ;;  %v522_v17 = vstv %s1488_s24  ;;  %v537_v18 = vstv %s1493_s25  ;;  %s1583_s25 = sld [smem:[#allocation9 + $0x32]]  ;;  %s1673_s23 = sld [smem:[#allocation9 + $0x3b]] }
  0x80   :  { %v491_v16 = vadd.f32 %v490_v4, %v480_v8  ;;  %v540_v19 = vstv %s1495_s26  ;;  %v530_v22 = vadd.f32 %v529_v11, %v527_v15  ;;  %v538_v23 = vmul.f32 %v537_v18, %v1102_v0  ;;  %s1588_s26 = sld [smem:[#allocation4 + $0x34]]  ;;  %s1678_s24 = sld [smem:[#allocation4 + $0x3d]] }
  0x81   :  { %v512_v20 = vmul.f32 %v511_v9, %v509_v13  ;;  %v520_v21 = vmax.f32 %v519_v14, 0.0  ;;  %v533_v25 = vstv %s1498_s27  ;;  %v548_v26 = vstv %s1503_s28  ;;  %s1590_s27 = sld [smem:[#allocation7 + $0x34]]  ;;  %s1598_s28 = sld [smem:[#allocation4 + $0x35]] }
  0x82   :  { %v502_v24 = vadd.f32 %v501_v12, %v491_v16  ;;  %v551_v27 = vstv %s1505_s2  ;;  %v531_v29 = vmax.f32 %v530_v22, 0.0  ;;  %v541_v30 = vadd.f32 %v540_v19, %v538_v23  ;;  %s1600_s2 = sld [smem:[#allocation7 + $0x35]] }
  0x83   :  { %v523_v28 = vmul.f32 %v522_v17, %v520_v21  ;;  %v549_v31 = vmul.f32 %v548_v26, %v1102_v0  ;;  %v544_v33 = vstv %s1508_s1  ;;  %v559_v34 = vstv %s1513_s29  ;;  %s1603_s1 = sld [smem:[#allocation9 + $0x34]]  ;;  %s1608_s29 = sld [smem:[#allocation4 + $0x36]] }
  0x84   :  { %v513_v32 = vadd.f32 %v512_v20, %v502_v24  ;;  %v562_v35 = vstv %s1515_s30  ;;  %v534_v36 = vmul.f32 %v533_v25, %v531_v29  ;;  %v542_v37 = vmax.f32 %v541_v30, 0.0  ;;  %s1610_s30 = sld [smem:[#allocation7 + $0x36]] }
  0x85   :  { %v552_v38 = vadd.f32 %v551_v27, %v549_v31  ;;  %v560_v39 = vmul.f32 %v559_v34, %v1102_v0  ;;  %v555_v41 = vstv %s1518_s7  ;;  %v570_v42 = vstv %s1523_s8  ;;  %s1613_s7 = sld [smem:[#allocation9 + $0x35]]  ;;  %s1618_s8 = sld [smem:[#allocation4 + $0x37]] }
  0x86   :  { %v524_v40 = vadd.f32 %v523_v28, %v513_v32  ;;  %v573_v43 = vstv %s1525_s9  ;;  %v545_v44 = vmul.f32 %v544_v33, %v542_v37  ;;  %v571_v47 = vmul.f32 %v570_v42, %v1102_v0  ;;  %v1580_v0 = vld [vmem:[%s1745_s5] sm:$0xff]  ;;  %s1593_s5 = sld [smem:[#allocation9 + $0x33]]  ;;  %s1620_s9 = sld [smem:[#allocation7 + $0x37]] }
  0x87   :  { %v553_v45 = vmax.f32 %v552_v38, 0.0  ;;  %v563_v46 = vadd.f32 %v562_v35, %v560_v39  ;;  %v566_v49 = vstv %s1528_s10  ;;  %v581_v50 = vstv %s1533_s11  ;;  %s1623_s10 = sld [smem:[#allocation9 + $0x36]]  ;;  %s1628_s11 = sld [smem:[#allocation4 + $0x38]] }
  0x88   :  { %v535_v48 = vadd.f32 %v534_v36, %v524_v40  ;;  %v584_v51 = vstv %s1535_s3  ;;  %v574_v54 = vadd.f32 %v573_v43, %v571_v47  ;;  %v582_v55 = vmul.f32 %v1580_v0, %v581_v50  ;;  %s1630_s3 = sld [smem:[#allocation7 + $0x38]] }
  0x89   :  { %v556_v52 = vmul.f32 %v555_v41, %v553_v45  ;;  %v564_v53 = vmax.f32 %v563_v46, 0.0  ;;  %v577_v57 = vstv %s1538_s12  ;;  %v592_v58 = vstv %s1543_s13  ;;  %s1633_s12 = sld [smem:[#allocation9 + $0x37]]  ;;  %s1638_s13 = sld [smem:[#allocation4 + $0x39]] }
  0x8a   :  { %v546_v56 = vadd.f32 %v545_v44, %v535_v48  ;;  %v595_v59 = vstv %s1545_s14  ;;  %v575_v61 = vmax.f32 %v574_v54, 0.0  ;;  %v585_v62 = vadd.f32 %v584_v51, %v582_v55  ;;  %s1640_s14 = sld [smem:[#allocation7 + $0x39]] }
  0x8b   :  { %v567_v60 = vmul.f32 %v566_v49, %v564_v53  ;;  %v593_v63 = vmul.f32 %v1580_v0, %v592_v58  ;;  %v588_v2 = vstv %s1548_s15  ;;  %v603_v3 = vstv %s1553_s16  ;;  %s1643_s15 = sld [smem:[#allocation9 + $0x38]]  ;;  %s1648_s16 = sld [smem:[#allocation4 + $0x3a]] }
  0x8c   :  { %v557_v1 = vadd.f32 %v556_v52, %v546_v56  ;;  %v606_v4 = vstv %s1555_s17  ;;  %v578_v5 = vmul.f32 %v577_v57, %v575_v61  ;;  %v586_v6 = vmax.f32 %v585_v62, 0.0  ;;  %s1650_s17 = sld [smem:[#allocation7 + $0x3a]] }
  0x8d   :  { %v596_v7 = vadd.f32 %v595_v59, %v593_v63  ;;  %v604_v8 = vmul.f32 %v1580_v0, %v603_v3  ;;  %v599_v10 = vstv %s1558_s18  ;;  %v614_v11 = vstv %s1563_s19  ;;  %s1653_s18 = sld [smem:[#allocation9 + $0x39]]  ;;  %s1658_s19 = sld [smem:[#allocation4 + $0x3b]] }
  0x8e   :  { %v568_v9 = vadd.f32 %v567_v60, %v557_v1  ;;  %v617_v12 = vstv %s1565_s20  ;;  %v589_v13 = vmul.f32 %v588_v2, %v586_v6  ;;  %v615_v16 = vmul.f32 %v1580_v0, %v614_v11  ;;  %s1660_s20 = sld [smem:[#allocation7 + $0x3b]] }
  0x8f   :  { %v597_v14 = vmax.f32 %v596_v7, 0.0  ;;  %v607_v15 = vadd.f32 %v606_v4, %v604_v8  ;;  %v610_v18 = vstv %s1568_s0  ;;  %v625_v19 = vstv %s1573_s21  ;;  %s1663_s0 = sld [smem:[#allocation9 + $0x3a]]  ;;  %s1668_s21 = sld [smem:[#allocation4 + $0x3c]] }
  0x90   :  { %v579_v17 = vadd.f32 %v578_v5, %v568_v9  ;;  %v628_v20 = vstv %s1575_s22  ;;  %v618_v23 = vadd.f32 %v617_v12, %v615_v16  ;;  %v626_v24 = vmul.f32 %v1580_v0, %v625_v19  ;;  %s1670_s22 = sld [smem:[#allocation7 + $0x3c]] }
  0x91   :  { %v600_v21 = vmul.f32 %v599_v10, %v597_v14  ;;  %v608_v22 = vmax.f32 %v607_v15, 0.0  ;;  %v621_v26 = vstv %s1583_s25  ;;  %v636_v27 = vstv %s1588_s26  ;;  %s1680_s25 = sld [smem:[#allocation7 + $0x3d]]  ;;  %s1683_s26 = sld [smem:[#allocation9 + $0x3c]] }
  0x92   :  { %v590_v25 = vadd.f32 %v589_v13, %v579_v17  ;;  %v639_v28 = vstv %s1590_s27  ;;  %v619_v30 = vmax.f32 %v618_v23, 0.0  ;;  %v629_v31 = vadd.f32 %v628_v20, %v626_v24  ;;  %s1688_s27 = sld [smem:[#allocation4 + $0x3e]] }
  0x93   :  { %v611_v29 = vmul.f32 %v610_v18, %v608_v22  ;;  %v637_v32 = vmul.f32 %v1580_v0, %v636_v27  ;;  %v632_v34 = vstv %s1593_s5  ;;  %v647_v35 = vstv %s1598_s28  ;;  %s1690_s5 = sld [smem:[#allocation7 + $0x3e]]  ;;  %s1693_s28 = sld [smem:[#allocation9 + $0x3d]] }
  0x94   :  { %v601_v33 = vadd.f32 %v600_v21, %v590_v25  ;;  %v650_v36 = vstv %s1600_s2  ;;  %v622_v37 = vmul.f32 %v621_v26, %v619_v30  ;;  %v630_v38 = vmax.f32 %v629_v31, 0.0  ;;  %s1698_s2 = sld [smem:[#allocation4 + $0x3f]] }
  0x95   :  { %v640_v39 = vadd.f32 %v639_v28, %v637_v32  ;;  %v648_v40 = vmul.f32 %v1580_v0, %v647_v35  ;;  %v643_v42 = vstv %s1603_s1  ;;  %v658_v43 = vstv %s1608_s29  ;;  %s1700_s1 = sld [smem:[#allocation7 + $0x3f]]  ;;  %s1706_s29 = sld [smem:[#allocation9 + $0x3e]] }
  0x96   :  { %v612_v41 = vadd.f32 %v611_v29, %v601_v33  ;;  %v661_v44 = vstv %s1610_s30  ;;  %v633_v45 = vmul.f32 %v632_v34, %v630_v38  ;;  %v659_v48 = vmul.f32 %v1580_v0, %v658_v43  ;;  %s1712_s30 = sld [smem:[#allocation9 + $0x3f]] }
  0x97   :  { %v641_v46 = vmax.f32 %v640_v39, 0.0  ;;  %v651_v47 = vadd.f32 %v650_v36, %v648_v40  ;;  %v654_v50 = vstv %s1613_s7  ;;  %v669_v51 = vstv %s1618_s8 }
  0x98   :  { %v623_v49 = vadd.f32 %v622_v37, %v612_v41  ;;  %v672_v52 = vstv %s1620_s9  ;;  %v662_v55 = vadd.f32 %v661_v44, %v659_v48  ;;  %v670_v56 = vmul.f32 %v1580_v0, %v669_v51  ;;  %s1048_s9 = smov [#allocation10]  }
  0x99   :  { %v644_v53 = vmul.f32 %v643_v42, %v641_v46  ;;  %v652_v54 = vmax.f32 %v651_v47, 0.0  ;;  %v665_v58 = vstv %s1623_s10  ;;  %v680_v59 = vstv %s1628_s11  ;;  %s777_s10 = sshll.u32 %s1048_s9, 4  ;;  %s778_s10 = int_to_ptr.vmem [resolvable:$true] %s777_s10 }
  0x9a   :  { %v634_v57 = vadd.f32 %v633_v45, %v623_v49  ;;  %v683_v60 = vstv %s1630_s3  ;;  %v663_v62 = vmax.f32 %v662_v55, 0.0  ;;  %v673_v63 = vadd.f32 %v672_v52, %v670_v56  ;;  %s1017_s11 = scalar_lea.vmem %s778_s10, 128  ;;  %p1022_p2 = scmp.lt.s32.totalorder %s778_s10, %s778_s10 }
  0x9b   :  { %v655_v61 = vmul.f32 %v654_v50, %v652_v54  ;;  %v681_v1 = vmul.f32 %v1580_v0, %v680_v59  ;;  %v676_v3 = vstv %s1633_s12  ;;  %v691_v4 = vstv %s1638_s13  ;;  %p1018_p1 = scmp.ne.s32.totalorder %s778_s10, %s1017_s11  ;;  %p1023_p3 = scmp.lt.s32.totalorder %s1017_s11, %s1017_s11 }
  0x9c   :  { %v645_v2 = vadd.f32 %v644_v53, %v634_v57  ;;  %v694_v5 = vstv %s1640_s14  ;;  %v666_v6 = vmul.f32 %v665_v58, %v663_v62  ;;  %v674_v7 = vmax.f32 %v673_v63, 0.0 }
  0x9d   :  { %v684_v8 = vadd.f32 %v683_v60, %v681_v1  ;;  %v692_v9 = vmul.f32 %v1580_v0, %v691_v4  ;;  %v687_v11 = vstv %s1643_s15  ;;  %v702_v12 = vstv %s1648_s16  ;;  %p1024_p4 = por %p1023_p3, %p1022_p2 }
  0x9e   :  { %v656_v10 = vadd.f32 %v655_v61, %v645_v2  ;;  %v705_v13 = vstv %s1650_s17  ;;  %v677_v14 = vmul.f32 %v676_v3, %v674_v7  ;;  %v703_v17 = vmul.f32 %v1580_v0, %v702_v12 }
  0x9f   :  { %v685_v15 = vmax.f32 %v684_v8, 0.0  ;;  %v695_v16 = vadd.f32 %v694_v5, %v692_v9  ;;  %v698_v19 = vstv %s1653_s18  ;;  %v713_v20 = vstv %s1658_s19  ;;  %p1025_p5 = pnand %p1024_p4, %p1018_p1 }
  0xa0   :  { %v667_v18 = vadd.f32 %v666_v6, %v656_v10  ;;  %v716_v21 = vstv %s1660_s20  ;;  %v706_v24 = vadd.f32 %v705_v13, %v703_v17  ;;  %v714_v25 = vmul.f32 %v1580_v0, %v713_v20 }
  0xa1   :  { %v688_v22 = vmul.f32 %v687_v11, %v685_v15  ;;  %v696_v23 = vmax.f32 %v695_v16, 0.0  ;;  %v709_v27 = vstv %s1663_s0  ;;  %v724_v28 = vstv %s1668_s21 }
  0xa2   :  { %v678_v26 = vadd.f32 %v677_v14, %v667_v18  ;;  %v727_v29 = vstv %s1670_s22  ;;  %v707_v31 = vmax.f32 %v706_v24, 0.0  ;;  %v717_v32 = vadd.f32 %v716_v21, %v714_v25 }
  0xa3   :  { %v699_v30 = vmul.f32 %v698_v19, %v696_v23  ;;  %v725_v33 = vmul.f32 %v1580_v0, %v724_v28  ;;  %v720_v35 = vstv %s1673_s23  ;;  %v735_v36 = vstv %s1678_s24 }
  0xa4   :  { %v689_v34 = vadd.f32 %v688_v22, %v678_v26  ;;  %v738_v37 = vstv %s1680_s25  ;;  %v710_v38 = vmul.f32 %v709_v27, %v707_v31  ;;  %v718_v39 = vmax.f32 %v717_v32, 0.0 }
  0xa5   :  { %v728_v40 = vadd.f32 %v727_v29, %v725_v33  ;;  %v736_v41 = vmul.f32 %v1580_v0, %v735_v36  ;;  %v731_v43 = vstv %s1683_s26  ;;  %v746_v44 = vstv %s1688_s27 }
  0xa6   :  { %v700_v42 = vadd.f32 %v699_v30, %v689_v34  ;;  %v749_v45 = vstv %s1690_s5  ;;  %v721_v46 = vmul.f32 %v720_v35, %v718_v39  ;;  %v747_v49 = vmul.f32 %v1580_v0, %v746_v44 }
  0xa7   :  { %v729_v47 = vmax.f32 %v728_v40, 0.0  ;;  %v739_v48 = vadd.f32 %v738_v37, %v736_v41  ;;  %v742_v51 = vstv %s1693_s28  ;;  %v757_v52 = vstv %s1698_s2 }
  0xa8   :  { %v711_v50 = vadd.f32 %v710_v38, %v700_v42  ;;  %v760_v53 = vstv %s1700_s1  ;;  %v750_v56 = vadd.f32 %v749_v45, %v747_v49  ;;  %v758_v57 = vmul.f32 %v1580_v0, %v757_v52 }
  0xa9   :  { %v732_v54 = vmul.f32 %v731_v43, %v729_v47  ;;  %v740_v55 = vmax.f32 %v739_v48, 0.0  ;;  %v753_v59 = vstv %s1706_s29  ;;  %v764_v1 = vstv %s1712_s30 }
  0xaa   :  { %v722_v58 = vadd.f32 %v721_v46, %v711_v50  ;;  %v751_v61 = vmax.f32 %v750_v56, 0.0  ;;  %v761_v62 = vadd.f32 %v760_v53, %v758_v57  ;;  %v768_v7 = vstv %s1744_s4 }
  0xab   :  { %v743_v60 = vmul.f32 %v742_v51, %v740_v55 }
  0xac   :  { %v733_v63 = vadd.f32 %v732_v54, %v722_v58  ;;  %v754_v2 = vmul.f32 %v753_v59, %v751_v61  ;;  %v762_v3 = vmax.f32 %v761_v62, 0.0 }
  0xae   :  { %v744_v4 = vadd.f32 %v743_v60, %v733_v63  ;;  %v765_v5 = vmul.f32 %v764_v1, %v762_v3 }
  0xb0   :  { %v755_v6 = vadd.f32 %v754_v2, %v744_v4 }
  0xb2   :  { %v766_v8 = vadd.f32 %v765_v5, %v755_v6 }
  0xb4   :  { %v769_v0 = vadd.f32 %v768_v7, %v766_v8 }
  0xb6   :  { %770 = vst [vmem:[#allocation10] sm:$0xff] %v769_v0 }
  0xb7   :  { %1028 = shalt.err (!%p1025_p5)
}
  0xb8   :  { %s1029_s13 = scalar_lea.hbm %s1746_s6, 128 }
  0xb9   :  { %p1030_p6 = scmp.ne.s32.totalorder %s1746_s6, %s1029_s13  ;;  %p1033_p7 = scmp.lt.u32.totalorder %s1029_s13, %s1746_s6 }
  0xbb   :  { %p1035_p8 = pnand %p1033_p7, %p1030_p6 }
  0xbd   :  { %1038 = shalt.err (!%p1035_p8)
}
  0xbe   :  { %780 = dma.vmem_to_hbm [thread:$0]  %s778_s10, 128, %s1746_s6, [#allocation5]  }
  0xbf   :  { %1043 = dma.done.wait [#allocation5], 128  }
  0xc0   :  { %1044 = vsyncadd [#allocation5], 4294967168 }
  0xc1   :  { %784 = vsyncpa [#allocation5], 1 }
  0xc2   :  { %785 = vsyncpa [#allocation6], 1 }
  0xc3   :  { %786 = vsyncpa [#allocation8], 1 }

</bundles_post_ra>
